<compile_context>
chip_gen: v5e
topology: v5e:2x2
jax: 0.10.0
libtpu: 0.0.40
codegen_flags: <defaults>
</compile_context>

<pallas_src>
import jax
import jax.numpy as jnp
import numpy as np
from jax.experimental import pallas as pl
from jax.experimental.pallas import tpu as pltpu

# ---- module hyper-parameters (MonomialBasicBlock defaults, small demo size) ----
IN_PLANES = 4
PLANES = 4
STRIDE = 1
NUM_TERMS = 3
EXP_RANGE = (1, 10)
EXP_FACTOR = 2
NUM_SEEDS = PLANES // EXP_FACTOR
MAX_EXP = EXP_RANGE[1]
NBITS = max(1, int(MAX_EXP).bit_length())   # 4 bit levels for exp_range (1, 10)
BN_EPS = 1e-5

N, H, W = 2, 16, 16          # batch, spatial
M = N * H * W                # flattened batch*spatial (lane axis, 512 = 4*128)
TP = NUM_TERMS * PLANES      # folded "base" rows (12)
KDIM = 9 * IN_PLANES         # merged-tap contraction depth (36)
PAD = 128                    # lane-aligned halo slack for the flat layout
H_SHIFT = W.bit_length() - 1

assert (H & (H - 1)) == 0 and (W & (W - 1)) == 0, "bit-trick masks need pow2 H,W"
assert PAD >= W + 1
assert M % 128 == 0
assert IN_PLANES == PLANES and STRIDE == 1, "only identity-shortcut path modeled"


# --------------------------------- kernel --------------------------------------
def _fused_block_kernel(x_ref, w_ref, pp_ref, out_ref, pf_ref, taps_ref):
    f32 = jnp.float32

    # ---- 9 tap-validity masks, computed once and reused by both convs ----
    m_i = jax.lax.broadcasted_iota(jnp.int32, (1, M), 1)
    wpos = m_i & (W - 1)
    hpos = (m_i >> H_SHIFT) & (H - 1)
    hm = (hpos >= 1, None, hpos <= H - 2)
    wm = (wpos >= 1, None, wpos <= W - 2)
    masks = []
    for dy in range(3):
        for dx in range(3):
            a, b = hm[dy], wm[dx]
            if a is None:
                masks.append(b)
            elif b is None:
                masks.append(a)
            else:
                masks.append(jnp.logical_and(a, b))

    def mono_conv(ci):
        """3x3 monomial conv: merged im2col operand (9*Cin, M) + one K=36 dot."""
        for dy in range(3):
            for dx in range(3):
                r = dy * 3 + dx
                off = (dy - 1) * W + (dx - 1)
                tap = pf_ref[:, PAD + off:PAD + off + M]           # (Cin, M)
                if masks[r] is not None:
                    tap = jnp.where(masks[r], tap, 0.0)
                taps_ref[r * IN_PLANES:(r + 1) * IN_PLANES, :] = tap
        # single MXU contraction per conv (was 9 K=4 dots + VPU accumulates)
        bases = jnp.dot(w_ref[ci], taps_ref[...],
                        preferred_element_type=f32)                # (TP, M)
        # integer powers via binary exponentiation driven by float bit-indicators
        p = bases
        res = jnp.where(pp_ref[ci, 0] > 0.5, p, 1.0)
        for k in range(1, NBITS):
            p = p * p
            res = res * jnp.where(pp_ref[ci, k] > 0.5, p, 1.0)
        prod = res[0:PLANES, :]
        for t in range(1, NUM_TERMS):
            prod = prod * res[t * PLANES:(t + 1) * PLANES, :]
        return prod                                                # (PLANES, M)

    def bn(y, ci):
        """Training-mode BatchNorm2d over the lane (N*H*W) axis, two-pass variance."""
        gamma = pp_ref[ci, NBITS][0:PLANES]                        # (PLANES, 1)
        beta = pp_ref[ci, NBITS + 1][0:PLANES]                     # (PLANES, 1)
        inv_m = 1.0 / float(M)
        mean = jnp.sum(y, axis=1, keepdims=True) * inv_m
        d = y - mean
        var = jnp.sum(d * d, axis=1, keepdims=True) * inv_m
        scale = gamma * jax.lax.rsqrt(var + BN_EPS)
        return d * scale + beta

    # ---- stage x into the lane-padded VMEM scratch (halos left stale: every
    #      halo-lane tap read is zeroed by the masks above before use) ----
    pf_ref[:, PAD:PAD + M] = x_ref[...]

    # ---- conv1 -> bn1 -> relu ----
    o1 = jnp.maximum(bn(mono_conv(0), 0), 0.0)                     # (PLANES, M)

    # ---- reuse the same padded scratch as conv2's input (o1 is a value here) ----
    pf_ref[:, PAD:PAD + M] = o1

    # ---- conv2 -> bn2 -> (+ identity shortcut) -> relu ----
    o2 = bn(mono_conv(1), 1)
    out_ref[...] = jnp.maximum(o2 + x_ref[...], 0.0)


# --------------------------------- wrapper --------------------------------------
def _run_block(x_cm, w_eff, pp):
    out_shape = jax.ShapeDtypeStruct((PLANES, M), jnp.float32)
    return pl.pallas_call(
        _fused_block_kernel,
        out_shape=out_shape,
        grid=(1,),
        in_specs=[
            pl.BlockSpec(x_cm.shape, lambda i: (0, 0)),
            pl.BlockSpec(w_eff.shape, lambda i: (0, 0, 0)),
            pl.BlockSpec(pp.shape, lambda i: (0, 0, 0, 0)),
        ],
        out_specs=pl.BlockSpec(out_shape.shape, lambda i: (0, 0)),
        scratch_shapes=[
            pltpu.VMEM((IN_PLANES, 2 * PAD + M), jnp.float32),   # padded x / o1
            pltpu.VMEM((KDIM, M), jnp.float32),                  # merged im2col taps
        ],
        compiler_params=pltpu.CompilerParams(dimension_semantics=("arbitrary",)),
    )(x_cm, w_eff, pp)


def monomial_basic_block(x_nchw, p):
    # glue: NCHW -> lane-dense (C, N*H*W); no wrapper-side padding (done in VMEM)
    x_cm = jnp.transpose(x_nchw, (1, 0, 2, 3)).astype(jnp.float32).reshape(IN_PLANES, M)
    out_cm = _run_block(x_cm, p["w_eff"], p["pp"])                 # (PLANES, M)
    return jnp.transpose(out_cm.reshape(PLANES, N, H, W), (1, 0, 2, 3))  # NCHW


# ----------------------------- deterministic init ------------------------------
def _fold_weights(w, idx):
    """Fold the one-hot seed selection into the conv weights and merge the taps.
    w: (3, 3, Cin, S), idx: (T, P) ints -> (T*P, 9*Cin); row r = t*P + j,
    col (dy*3+dx)*Cin + c (matches the im2col taps layout)."""
    w_sel = w[..., idx]                                  # (3, 3, Cin, T, P)
    w_sel = jnp.transpose(w_sel, (3, 4, 0, 1, 2))        # (T, P, 3, 3, Cin)
    return w_sel.reshape(TP, 9 * w.shape[2])


def _pack_params(e, gamma, beta):
    """Pack exponent bit-indicators + gamma/beta into one (NBITS+2, TP, 1) f32."""
    e_flat = np.asarray(e, np.int64).reshape(-1)         # row r = t*P + j
    rows = [((e_flat >> k) & 1).astype(np.float32) for k in range(NBITS)]
    g = np.zeros((TP,), np.float32)
    b = np.zeros((TP,), np.float32)
    g[:PLANES] = np.asarray(gamma, np.float32)
    b[:PLANES] = np.asarray(beta, np.float32)
    rows += [g, b]
    return np.stack(rows)[:, :, None]                    # (NBITS+2, TP, 1)


def init_params(key):
    k1, k2, k3, k4, k5, k6 = jax.random.split(key, 6)
    wscale = 0.08
    w1 = wscale * jax.random.normal(k1, (3, 3, IN_PLANES, NUM_SEEDS), jnp.float32)
    w2 = wscale * jax.random.normal(k2, (3, 3, PLANES, NUM_SEEDS), jnp.float32)
    idx1 = np.array(jax.random.randint(k3, (NUM_TERMS, PLANES), 0, NUM_SEEDS))
    idx2 = np.array(jax.random.randint(k4, (NUM_TERMS, PLANES), 0, NUM_SEEDS))
    e1 = np.array(jax.random.randint(k5, (NUM_TERMS, PLANES), EXP_RANGE[0], EXP_RANGE[1] + 1))
    e2 = np.array(jax.random.randint(k6, (NUM_TERMS, PLANES), EXP_RANGE[0], EXP_RANGE[1] + 1))
    g1 = jnp.ones((PLANES,), jnp.float32)
    b1 = jnp.zeros((PLANES,), jnp.float32)
    g2 = jnp.ones((PLANES,), jnp.float32)
    b2 = jnp.zeros((PLANES,), jnp.float32)

    # packed kernel-ready parameters (2 small tensors -> 2 tiny input DMAs)
    w_eff = jnp.stack([_fold_weights(w1, idx1), _fold_weights(w2, idx2)])   # (2, TP, 36)
    pp = jnp.asarray(np.stack([_pack_params(e1, g1, b1),
                               _pack_params(e2, g2, b2)]), jnp.float32)     # (2, 6, TP, 1)

    return dict(w1=w1, w2=w2, idx1=idx1, idx2=idx2, e1=e1, e2=e2,
                g1=g1, b1=b1, g2=g2, b2=b2,
                w_eff=w_eff, pp=pp)


# ------------------------------ pure-JAX reference ------------------------------
def _ref_mono_conv(x, w, idx, exps_int):
    xpad = jnp.pad(x, ((0, 0), (1, 1), (1, 1), (0, 0)))
    seeds = jnp.zeros((N, H, W, NUM_SEEDS), jnp.float32)
    for dy in range(3):
        for dx in range(3):
            seeds = seeds + jnp.einsum("nhwc,cs->nhws",
                                       xpad[:, dy:dy + H, dx:dx + W, :], w[dy, dx])
    cols = []
    for j in range(PLANES):
        col = jnp.ones((N, H, W), jnp.float32)
        for t in range(NUM_TERMS):
            col = col * seeds[..., int(idx[t, j])] ** int(exps_int[t, j])
        cols.append(col)
    return jnp.stack(cols, axis=-1)


def _ref_bn(x, gamma, beta):
    mean = jnp.mean(x, axis=(0, 1, 2), keepdims=True)
    var = jnp.mean((x - mean) ** 2, axis=(0, 1, 2), keepdims=True)
    return ((x - mean) / jnp.sqrt(var + BN_EPS)
            * gamma.reshape(1, 1, 1, -1) + beta.reshape(1, 1, 1, -1))


def reference_forward(x_nchw, p):
    x = jnp.transpose(x_nchw, (0, 2, 3, 1)).astype(jnp.float32)
    o1 = jnp.maximum(_ref_bn(_ref_mono_conv(x, p["w1"], p["idx1"], p["e1"]),
                             p["g1"], p["b1"]), 0.0)
    o2 = _ref_bn(_ref_mono_conv(o1, p["w2"], p["idx2"], p["e2"]), p["g2"], p["b2"])
    out = jnp.maximum(o2 + x, 0.0)
    return jnp.transpose(out, (0, 3, 1, 2))


# ------------------------------------ main --------------------------------------
if __name__ == "__main__":
    key = jax.random.PRNGKey(0)
    kx, kp = jax.random.split(key)
    x = jax.random.normal(kx, (N, IN_PLANES, H, W), jnp.float32)  # NCHW like PyTorch
    params = init_params(kp)

    out = jax.block_until_ready(monomial_basic_block(x, params))
    ref = jax.block_until_ready(reference_forward(x, params))

    assert out.shape == (N, PLANES, H, W)
    np.testing.assert_allclose(np.array(out), np.array(ref), rtol=5e-3, atol=5e-3)
    print("KERNEL_OK")
</pallas_src>

<mosaic_0001>
module attributes {stable_mosaic.version = 11 : i64} {
  func.func @_fused_block_kernel(%arg0: i32, %arg1: memref<4x512xf32, #tpu.memory_space<vmem>>, %arg2: memref<2x12x36xf32, #tpu.memory_space<vmem>>, %arg3: memref<2x6x12x1xf32, #tpu.memory_space<vmem>>, %arg4: memref<4x512xf32, #tpu.memory_space<vmem>>, %arg5: memref<4x768xf32, #tpu.memory_space<vmem>>, %arg6: memref<36x512xf32, #tpu.memory_space<vmem>>) attributes {dimension_semantics = [#tpu.dimension_semantics<arbitrary>], iteration_bounds = array<i64: 1>, scalar_prefetch = 0 : i64, scratch_operands = 2 : i64, tpu.core_type = #tpu.core_type<tc>, window_params = [{pipeline_mode = #tpu.pipeline_mode<synchronous>, transform_indices = @transform_0, window_bounds = array<i64: 4, 512>}, {pipeline_mode = #tpu.pipeline_mode<synchronous>, transform_indices = @transform_1, window_bounds = array<i64: 2, 12, 36>}, {pipeline_mode = #tpu.pipeline_mode<synchronous>, transform_indices = @transform_2, window_bounds = array<i64: 2, 6, 12, 1>}, {pipeline_mode = #tpu.pipeline_mode<synchronous>, transform_indices = @transform_3, window_bounds = array<i64: 4, 512>}]} {
    %0 = tpu.iota {dimensions = array<i32: 1>} : vector<1x512xi32>
    %c15_i32 = arith.constant 15 : i32
    %1 = vector.broadcast %c15_i32 : i32 to vector<1x512xi32>
    %2 = arith.andi %0, %1 : vector<1x512xi32>
    %c4_i32 = arith.constant 4 : i32
    %3 = vector.broadcast %c4_i32 : i32 to vector<1x512xi32>
    %4 = arith.shrsi %0, %3 : vector<1x512xi32>
    %c15_i32_0 = arith.constant 15 : i32
    %5 = vector.broadcast %c15_i32_0 : i32 to vector<1x512xi32>
    %6 = arith.andi %4, %5 : vector<1x512xi32>
    %c1_i32 = arith.constant 1 : i32
    %7 = vector.broadcast %c1_i32 : i32 to vector<1x512xi32>
    %8 = arith.cmpi sge, %6, %7 : vector<1x512xi32>
    %c14_i32 = arith.constant 14 : i32
    %9 = vector.broadcast %c14_i32 : i32 to vector<1x512xi32>
    %10 = arith.cmpi sle, %6, %9 : vector<1x512xi32>
    %c1_i32_1 = arith.constant 1 : i32
    %11 = vector.broadcast %c1_i32_1 : i32 to vector<1x512xi32>
    %12 = arith.cmpi sge, %2, %11 : vector<1x512xi32>
    %c14_i32_2 = arith.constant 14 : i32
    %13 = vector.broadcast %c14_i32_2 : i32 to vector<1x512xi32>
    %14 = arith.cmpi sle, %2, %13 : vector<1x512xi32>
    %15 = arith.andi %8, %12 : vector<1x512xi1>
    %16 = arith.andi %8, %14 : vector<1x512xi1>
    %17 = arith.andi %10, %12 : vector<1x512xi1>
    %18 = arith.andi %10, %14 : vector<1x512xi1>
    %c0 = arith.constant 0 : index
    %c0_3 = arith.constant 0 : index
    %19 = vector.load %arg1[%c0, %c0_3] : memref<4x512xf32, #tpu.memory_space<vmem>>, vector<4x512xf32>
    %c0_4 = arith.constant 0 : index
    %c128 = arith.constant 128 : index
    %20 = vector.load %arg5[%c0_4, %c128] : memref<4x768xf32, #tpu.memory_space<vmem>>, vector<4x512xf32>
    tpu.vector_store %arg5[%c0_4, %c128], %19 {strides = array<i32>} : memref<4x768xf32, #tpu.memory_space<vmem>>, vector<4x512xf32>,
    %c0_5 = arith.constant 0 : index
    %c111 = arith.constant 111 : index
    %21 = vector.load %arg5[%c0_5, %c111] : memref<4x768xf32, #tpu.memory_space<vmem>>, vector<4x512xf32>
    %cst = arith.constant 0.000000e+00 : f32
    %22 = vector.shape_cast %15 : vector<1x512xi1> to vector<1x512xi1>
    %23 = vector.broadcast %22 : vector<1x512xi1> to vector<4x512xi1>
    %24 = vector.broadcast %cst : f32 to vector<4x512xf32>
    %25 = arith.select %23, %21, %24 : vector<4x512xi1>, vector<4x512xf32>
    %c0_6 = arith.constant 0 : index
    %c0_7 = arith.constant 0 : index
    %26 = vector.load %arg6[%c0_6, %c0_7] : memref<36x512xf32, #tpu.memory_space<vmem>>, vector<4x512xf32>
    tpu.vector_store %arg6[%c0_6, %c0_7], %25 {strides = array<i32>} : memref<36x512xf32, #tpu.memory_space<vmem>>, vector<4x512xf32>,
    %c0_8 = arith.constant 0 : index
    %c112 = arith.constant 112 : index
    %27 = vector.load %arg5[%c0_8, %c112] : memref<4x768xf32, #tpu.memory_space<vmem>>, vector<4x512xf32>
    %cst_9 = arith.constant 0.000000e+00 : f32
    %28 = vector.shape_cast %8 : vector<1x512xi1> to vector<1x512xi1>
    %29 = vector.broadcast %28 : vector<1x512xi1> to vector<4x512xi1>
    %30 = vector.broadcast %cst_9 : f32 to vector<4x512xf32>
    %31 = arith.select %29, %27, %30 : vector<4x512xi1>, vector<4x512xf32>
    %c4 = arith.constant 4 : index
    %c0_10 = arith.constant 0 : index
    %32 = vector.load %arg6[%c4, %c0_10] : memref<36x512xf32, #tpu.memory_space<vmem>>, vector<4x512xf32>
    tpu.vector_store %arg6[%c4, %c0_10], %31 {strides = array<i32>} : memref<36x512xf32, #tpu.memory_space<vmem>>, vector<4x512xf32>,
    %c0_11 = arith.constant 0 : index
    %c113 = arith.constant 113 : index
    %33 = vector.load %arg5[%c0_11, %c113] : memref<4x768xf32, #tpu.memory_space<vmem>>, vector<4x512xf32>
    %cst_12 = arith.constant 0.000000e+00 : f32
    %34 = vector.shape_cast %16 : vector<1x512xi1> to vector<1x512xi1>
    %35 = vector.broadcast %34 : vector<1x512xi1> to vector<4x512xi1>
    %36 = vector.broadcast %cst_12 : f32 to vector<4x512xf32>
    %37 = arith.select %35, %33, %36 : vector<4x512xi1>, vector<4x512xf32>
    %c8 = arith.constant 8 : index
    %c0_13 = arith.constant 0 : index
    %38 = vector.load %arg6[%c8, %c0_13] : memref<36x512xf32, #tpu.memory_space<vmem>>, vector<4x512xf32>
    tpu.vector_store %arg6[%c8, %c0_13], %37 {strides = array<i32>} : memref<36x512xf32, #tpu.memory_space<vmem>>, vector<4x512xf32>,
    %c0_14 = arith.constant 0 : index
    %c127 = arith.constant 127 : index
    %39 = vector.load %arg5[%c0_14, %c127] : memref<4x768xf32, #tpu.memory_space<vmem>>, vector<4x512xf32>
    %cst_15 = arith.constant 0.000000e+00 : f32
    %40 = vector.shape_cast %12 : vector<1x512xi1> to vector<1x512xi1>
    %41 = vector.broadcast %40 : vector<1x512xi1> to vector<4x512xi1>
    %42 = vector.broadcast %cst_15 : f32 to vector<4x512xf32>
    %43 = arith.select %41, %39, %42 : vector<4x512xi1>, vector<4x512xf32>
    %c12 = arith.constant 12 : index
    %c0_16 = arith.constant 0 : index
    %44 = vector.load %arg6[%c12, %c0_16] : memref<36x512xf32, #tpu.memory_space<vmem>>, vector<4x512xf32>
    tpu.vector_store %arg6[%c12, %c0_16], %43 {strides = array<i32>} : memref<36x512xf32, #tpu.memory_space<vmem>>, vector<4x512xf32>,
    %c0_17 = arith.constant 0 : index
    %c128_18 = arith.constant 128 : index
    %45 = vector.load %arg5[%c0_17, %c128_18] : memref<4x768xf32, #tpu.memory_space<vmem>>, vector<4x512xf32>
    %c16 = arith.constant 16 : index
    %c0_19 = arith.constant 0 : index
    %46 = vector.load %arg6[%c16, %c0_19] : memref<36x512xf32, #tpu.memory_space<vmem>>, vector<4x512xf32>
    tpu.vector_store %arg6[%c16, %c0_19], %45 {strides = array<i32>} : memref<36x512xf32, #tpu.memory_space<vmem>>, vector<4x512xf32>,
    %c0_20 = arith.constant 0 : index
    %c129 = arith.constant 129 : index
    %47 = vector.load %arg5[%c0_20, %c129] : memref<4x768xf32, #tpu.memory_space<vmem>>, vector<4x512xf32>
    %cst_21 = arith.constant 0.000000e+00 : f32
    %48 = vector.shape_cast %14 : vector<1x512xi1> to vector<1x512xi1>
    %49 = vector.broadcast %48 : vector<1x512xi1> to vector<4x512xi1>
    %50 = vector.broadcast %cst_21 : f32 to vector<4x512xf32>
    %51 = arith.select %49, %47, %50 : vector<4x512xi1>, vector<4x512xf32>
    %c20 = arith.constant 20 : index
    %c0_22 = arith.constant 0 : index
    %52 = vector.load %arg6[%c20, %c0_22] : memref<36x512xf32, #tpu.memory_space<vmem>>, vector<4x512xf32>
    tpu.vector_store %arg6[%c20, %c0_22], %51 {strides = array<i32>} : memref<36x512xf32, #tpu.memory_space<vmem>>, vector<4x512xf32>,
    %c0_23 = arith.constant 0 : index
    %c143 = arith.constant 143 : index
    %53 = vector.load %arg5[%c0_23, %c143] : memref<4x768xf32, #tpu.memory_space<vmem>>, vector<4x512xf32>
    %cst_24 = arith.constant 0.000000e+00 : f32
    %54 = vector.shape_cast %17 : vector<1x512xi1> to vector<1x512xi1>
    %55 = vector.broadcast %54 : vector<1x512xi1> to vector<4x512xi1>
    %56 = vector.broadcast %cst_24 : f32 to vector<4x512xf32>
    %57 = arith.select %55, %53, %56 : vector<4x512xi1>, vector<4x512xf32>
    %c24 = arith.constant 24 : index
    %c0_25 = arith.constant 0 : index
    %58 = vector.load %arg6[%c24, %c0_25] : memref<36x512xf32, #tpu.memory_space<vmem>>, vector<4x512xf32>
    tpu.vector_store %arg6[%c24, %c0_25], %57 {strides = array<i32>} : memref<36x512xf32, #tpu.memory_space<vmem>>, vector<4x512xf32>,
    %c0_26 = arith.constant 0 : index
    %c144 = arith.constant 144 : index
    %59 = vector.load %arg5[%c0_26, %c144] : memref<4x768xf32, #tpu.memory_space<vmem>>, vector<4x512xf32>
    %cst_27 = arith.constant 0.000000e+00 : f32
    %60 = vector.shape_cast %10 : vector<1x512xi1> to vector<1x512xi1>
    %61 = vector.broadcast %60 : vector<1x512xi1> to vector<4x512xi1>
    %62 = vector.broadcast %cst_27 : f32 to vector<4x512xf32>
    %63 = arith.select %61, %59, %62 : vector<4x512xi1>, vector<4x512xf32>
    %c28 = arith.constant 28 : index
    %c0_28 = arith.constant 0 : index
    %64 = vector.load %arg6[%c28, %c0_28] : memref<36x512xf32, #tpu.memory_space<vmem>>, vector<4x512xf32>
    tpu.vector_store %arg6[%c28, %c0_28], %63 {strides = array<i32>} : memref<36x512xf32, #tpu.memory_space<vmem>>, vector<4x512xf32>,
    %c0_29 = arith.constant 0 : index
    %c145 = arith.constant 145 : index
    %65 = vector.load %arg5[%c0_29, %c145] : memref<4x768xf32, #tpu.memory_space<vmem>>, vector<4x512xf32>
    %cst_30 = arith.constant 0.000000e+00 : f32
    %66 = vector.shape_cast %18 : vector<1x512xi1> to vector<1x512xi1>
    %67 = vector.broadcast %66 : vector<1x512xi1> to vector<4x512xi1>
    %68 = vector.broadcast %cst_30 : f32 to vector<4x512xf32>
    %69 = arith.select %67, %65, %68 : vector<4x512xi1>, vector<4x512xf32>
    %c32 = arith.constant 32 : index
    %c0_31 = arith.constant 0 : index
    %70 = vector.load %arg6[%c32, %c0_31] : memref<36x512xf32, #tpu.memory_space<vmem>>, vector<4x512xf32>
    tpu.vector_store %arg6[%c32, %c0_31], %69 {strides = array<i32>} : memref<36x512xf32, #tpu.memory_space<vmem>>, vector<4x512xf32>,
    %c0_32 = arith.constant 0 : index
    %c0_33 = arith.constant 0 : index
    %c0_34 = arith.constant 0 : index
    %71 = vector.load %arg2[%c0_32, %c0_33, %c0_34] : memref<2x12x36xf32, #tpu.memory_space<vmem>>, vector<1x12x36xf32>
    %72 = vector.shape_cast %71 : vector<1x12x36xf32> to vector<12x36xf32>
    %c0_35 = arith.constant 0 : index
    %c0_36 = arith.constant 0 : index
    %73 = vector.load %arg6[%c0_35, %c0_36] : memref<36x512xf32, #tpu.memory_space<vmem>>, vector<36x512xf32>
    %cst_37 = arith.constant dense<0.000000e+00> : vector<12x512xf32>
    %74 = tpu.matmul %72, %73, %cst_37 {dimension_numbers = #tpu.dot_dimension_numbers<[1], [0], [0], [1], [0, 0, 1, 1], [], []>} : vector<12x36xf32>, vector<36x512xf32>, vector<12x512xf32> -> vector<12x512xf32>
    %c0_38 = arith.constant 0 : index
    %c0_39 = arith.constant 0 : index
    %c0_40 = arith.constant 0 : index
    %c0_41 = arith.constant 0 : index
    %75 = vector.load %arg3[%c0_38, %c0_39, %c0_40, %c0_41] : memref<2x6x12x1xf32, #tpu.memory_space<vmem>>, vector<1x1x12x1xf32>
    %76 = vector.shape_cast %75 : vector<1x1x12x1xf32> to vector<12x1xf32>
    %cst_42 = arith.constant 5.000000e-01 : f32
    %77 = vector.broadcast %cst_42 : f32 to vector<12x1xf32>
    %78 = arith.cmpf ogt, %76, %77 : vector<12x1xf32>
    %cst_43 = arith.constant 1.000000e+00 : f32
    %79 = vector.shape_cast %78 : vector<12x1xi1> to vector<12x1xi1>
    %80 = vector.broadcast %79 : vector<12x1xi1> to vector<12x512xi1>
    %81 = vector.broadcast %cst_43 : f32 to vector<12x512xf32>
    %82 = arith.select %80, %74, %81 : vector<12x512xi1>, vector<12x512xf32>
    %83 = arith.mulf %74, %74 : vector<12x512xf32>
    %c0_44 = arith.constant 0 : index
    %c1 = arith.constant 1 : index
    %c0_45 = arith.constant 0 : index
    %c0_46 = arith.constant 0 : index
    %84 = vector.load %arg3[%c0_44, %c1, %c0_45, %c0_46] : memref<2x6x12x1xf32, #tpu.memory_space<vmem>>, vector<1x1x12x1xf32>
    %85 = vector.shape_cast %84 : vector<1x1x12x1xf32> to vector<12x1xf32>
    %cst_47 = arith.constant 5.000000e-01 : f32
    %86 = vector.broadcast %cst_47 : f32 to vector<12x1xf32>
    %87 = arith.cmpf ogt, %85, %86 : vector<12x1xf32>
    %cst_48 = arith.constant 1.000000e+00 : f32
    %88 = vector.shape_cast %87 : vector<12x1xi1> to vector<12x1xi1>
    %89 = vector.broadcast %88 : vector<12x1xi1> to vector<12x512xi1>
    %90 = vector.broadcast %cst_48 : f32 to vector<12x512xf32>
    %91 = arith.select %89, %83, %90 : vector<12x512xi1>, vector<12x512xf32>
    %92 = arith.mulf %82, %91 : vector<12x512xf32>
    %93 = arith.mulf %83, %83 : vector<12x512xf32>
    %c0_49 = arith.constant 0 : index
    %c2 = arith.constant 2 : index
    %c0_50 = arith.constant 0 : index
    %c0_51 = arith.constant 0 : index
    %94 = vector.load %arg3[%c0_49, %c2, %c0_50, %c0_51] : memref<2x6x12x1xf32, #tpu.memory_space<vmem>>, vector<1x1x12x1xf32>
    %95 = vector.shape_cast %94 : vector<1x1x12x1xf32> to vector<12x1xf32>
    %cst_52 = arith.constant 5.000000e-01 : f32
    %96 = vector.broadcast %cst_52 : f32 to vector<12x1xf32>
    %97 = arith.cmpf ogt, %95, %96 : vector<12x1xf32>
    %cst_53 = arith.constant 1.000000e+00 : f32
    %98 = vector.shape_cast %97 : vector<12x1xi1> to vector<12x1xi1>
    %99 = vector.broadcast %98 : vector<12x1xi1> to vector<12x512xi1>
    %100 = vector.broadcast %cst_53 : f32 to vector<12x512xf32>
    %101 = arith.select %99, %93, %100 : vector<12x512xi1>, vector<12x512xf32>
    %102 = arith.mulf %92, %101 : vector<12x512xf32>
    %103 = arith.mulf %93, %93 : vector<12x512xf32>
    %c0_54 = arith.constant 0 : index
    %c3 = arith.constant 3 : index
    %c0_55 = arith.constant 0 : index
    %c0_56 = arith.constant 0 : index
    %104 = vector.load %arg3[%c0_54, %c3, %c0_55, %c0_56] : memref<2x6x12x1xf32, #tpu.memory_space<vmem>>, vector<1x1x12x1xf32>
    %105 = vector.shape_cast %104 : vector<1x1x12x1xf32> to vector<12x1xf32>
    %cst_57 = arith.constant 5.000000e-01 : f32
    %106 = vector.broadcast %cst_57 : f32 to vector<12x1xf32>
    %107 = arith.cmpf ogt, %105, %106 : vector<12x1xf32>
    %cst_58 = arith.constant 1.000000e+00 : f32
    %108 = vector.shape_cast %107 : vector<12x1xi1> to vector<12x1xi1>
    %109 = vector.broadcast %108 : vector<12x1xi1> to vector<12x512xi1>
    %110 = vector.broadcast %cst_58 : f32 to vector<12x512xf32>
    %111 = arith.select %109, %103, %110 : vector<12x512xi1>, vector<12x512xf32>
    %112 = arith.mulf %102, %111 : vector<12x512xf32>
    %113 = vector.extract_strided_slice %112 {offsets = [0, 0], sizes = [4, 512], strides = [1, 1]} : vector<12x512xf32> to vector<4x512xf32>
    %114 = vector.extract_strided_slice %112 {offsets = [4, 0], sizes = [4, 512], strides = [1, 1]} : vector<12x512xf32> to vector<4x512xf32>
    %115 = arith.mulf %113, %114 : vector<4x512xf32>
    %116 = vector.extract_strided_slice %112 {offsets = [8, 0], sizes = [4, 512], strides = [1, 1]} : vector<12x512xf32> to vector<4x512xf32>
    %117 = arith.mulf %115, %116 : vector<4x512xf32>
    %c0_59 = arith.constant 0 : index
    %c4_60 = arith.constant 4 : index
    %c0_61 = arith.constant 0 : index
    %c0_62 = arith.constant 0 : index
    %118 = vector.load %arg3[%c0_59, %c4_60, %c0_61, %c0_62] : memref<2x6x12x1xf32, #tpu.memory_space<vmem>>, vector<1x1x12x1xf32>
    %119 = vector.shape_cast %118 : vector<1x1x12x1xf32> to vector<12x1xf32>
    %120 = vector.extract_strided_slice %119 {offsets = [0, 0], sizes = [4, 1], strides = [1, 1]} : vector<12x1xf32> to vector<4x1xf32>
    %c0_63 = arith.constant 0 : index
    %c5 = arith.constant 5 : index
    %c0_64 = arith.constant 0 : index
    %c0_65 = arith.constant 0 : index
    %121 = vector.load %arg3[%c0_63, %c5, %c0_64, %c0_65] : memref<2x6x12x1xf32, #tpu.memory_space<vmem>>, vector<1x1x12x1xf32>
    %122 = vector.shape_cast %121 : vector<1x1x12x1xf32> to vector<12x1xf32>
    %123 = vector.extract_strided_slice %122 {offsets = [0, 0], sizes = [4, 1], strides = [1, 1]} : vector<12x1xf32> to vector<4x1xf32>
    %cst_66 = arith.constant dense<0.000000e+00> : vector<4xf32>
    %124 = vector.multi_reduction <add>, %117, %cst_66 [1] : vector<4x512xf32> to vector<4xf32>
    %125 = vector.shape_cast %124 : vector<4xf32> to vector<4x1xf32>
    %cst_67 = arith.constant 0.001953125 : f32
    %126 = vector.broadcast %cst_67 : f32 to vector<4x1xf32>
    %127 = arith.mulf %125, %126 : vector<4x1xf32>
    %128 = vector.broadcast %127 : vector<4x1xf32> to vector<4x512xf32>
    %129 = arith.subf %117, %128 : vector<4x512xf32>
    %130 = arith.mulf %129, %129 : vector<4x512xf32>
    %cst_68 = arith.constant dense<0.000000e+00> : vector<4xf32>
    %131 = vector.multi_reduction <add>, %130, %cst_68 [1] : vector<4x512xf32> to vector<4xf32>
    %132 = vector.shape_cast %131 : vector<4xf32> to vector<4x1xf32>
    %cst_69 = arith.constant 0.001953125 : f32
    %133 = vector.broadcast %cst_69 : f32 to vector<4x1xf32>
    %134 = arith.mulf %132, %133 : vector<4x1xf32>
    %cst_70 = arith.constant 9.99999974E-6 : f32
    %135 = vector.broadcast %cst_70 : f32 to vector<4x1xf32>
    %136 = arith.addf %134, %135 : vector<4x1xf32>
    %137 = math.rsqrt %136 : vector<4x1xf32>
    %138 = arith.mulf %120, %137 : vector<4x1xf32>
    %139 = vector.broadcast %138 : vector<4x1xf32> to vector<4x512xf32>
    %140 = arith.mulf %129, %139 : vector<4x512xf32>
    %141 = vector.broadcast %123 : vector<4x1xf32> to vector<4x512xf32>
    %142 = arith.addf %140, %141 : vector<4x512xf32>
    %cst_71 = arith.constant 0.000000e+00 : f32
    %143 = vector.broadcast %cst_71 : f32 to vector<4x512xf32>
    %144 = arith.maximumf %142, %143 : vector<4x512xf32>
    %c0_72 = arith.constant 0 : index
    %c128_73 = arith.constant 128 : index
    %145 = vector.load %arg5[%c0_72, %c128_73] : memref<4x768xf32, #tpu.memory_space<vmem>>, vector<4x512xf32>
    tpu.vector_store %arg5[%c0_72, %c128_73], %144 {strides = array<i32>} : memref<4x768xf32, #tpu.memory_space<vmem>>, vector<4x512xf32>,
    %c0_74 = arith.constant 0 : index
    %c111_75 = arith.constant 111 : index
    %146 = vector.load %arg5[%c0_74, %c111_75] : memref<4x768xf32, #tpu.memory_space<vmem>>, vector<4x512xf32>
    %cst_76 = arith.constant 0.000000e+00 : f32
    %147 = vector.shape_cast %15 : vector<1x512xi1> to vector<1x512xi1>
    %148 = vector.broadcast %147 : vector<1x512xi1> to vector<4x512xi1>
    %149 = vector.broadcast %cst_76 : f32 to vector<4x512xf32>
    %150 = arith.select %148, %146, %149 : vector<4x512xi1>, vector<4x512xf32>
    %c0_77 = arith.constant 0 : index
    %c0_78 = arith.constant 0 : index
    %151 = vector.load %arg6[%c0_77, %c0_78] : memref<36x512xf32, #tpu.memory_space<vmem>>, vector<4x512xf32>
    tpu.vector_store %arg6[%c0_77, %c0_78], %150 {strides = array<i32>} : memref<36x512xf32, #tpu.memory_space<vmem>>, vector<4x512xf32>,
    %c0_79 = arith.constant 0 : index
    %c112_80 = arith.constant 112 : index
    %152 = vector.load %arg5[%c0_79, %c112_80] : memref<4x768xf32, #tpu.memory_space<vmem>>, vector<4x512xf32>
    %cst_81 = arith.constant 0.000000e+00 : f32
    %153 = vector.shape_cast %8 : vector<1x512xi1> to vector<1x512xi1>
    %154 = vector.broadcast %153 : vector<1x512xi1> to vector<4x512xi1>
    %155 = vector.broadcast %cst_81 : f32 to vector<4x512xf32>
    %156 = arith.select %154, %152, %155 : vector<4x512xi1>, vector<4x512xf32>
    %c4_82 = arith.constant 4 : index
    %c0_83 = arith.constant 0 : index
    %157 = vector.load %arg6[%c4_82, %c0_83] : memref<36x512xf32, #tpu.memory_space<vmem>>, vector<4x512xf32>
    tpu.vector_store %arg6[%c4_82, %c0_83], %156 {strides = array<i32>} : memref<36x512xf32, #tpu.memory_space<vmem>>, vector<4x512xf32>,
    %c0_84 = arith.constant 0 : index
    %c113_85 = arith.constant 113 : index
    %158 = vector.load %arg5[%c0_84, %c113_85] : memref<4x768xf32, #tpu.memory_space<vmem>>, vector<4x512xf32>
    %cst_86 = arith.constant 0.000000e+00 : f32
    %159 = vector.shape_cast %16 : vector<1x512xi1> to vector<1x512xi1>
    %160 = vector.broadcast %159 : vector<1x512xi1> to vector<4x512xi1>
    %161 = vector.broadcast %cst_86 : f32 to vector<4x512xf32>
    %162 = arith.select %160, %158, %161 : vector<4x512xi1>, vector<4x512xf32>
    %c8_87 = arith.constant 8 : index
    %c0_88 = arith.constant 0 : index
    %163 = vector.load %arg6[%c8_87, %c0_88] : memref<36x512xf32, #tpu.memory_space<vmem>>, vector<4x512xf32>
    tpu.vector_store %arg6[%c8_87, %c0_88], %162 {strides = array<i32>} : memref<36x512xf32, #tpu.memory_space<vmem>>, vector<4x512xf32>,
    %c0_89 = arith.constant 0 : index
    %c127_90 = arith.constant 127 : index
    %164 = vector.load %arg5[%c0_89, %c127_90] : memref<4x768xf32, #tpu.memory_space<vmem>>, vector<4x512xf32>
    %cst_91 = arith.constant 0.000000e+00 : f32
    %165 = vector.shape_cast %12 : vector<1x512xi1> to vector<1x512xi1>
    %166 = vector.broadcast %165 : vector<1x512xi1> to vector<4x512xi1>
    %167 = vector.broadcast %cst_91 : f32 to vector<4x512xf32>
    %168 = arith.select %166, %164, %167 : vector<4x512xi1>, vector<4x512xf32>
    %c12_92 = arith.constant 12 : index
    %c0_93 = arith.constant 0 : index
    %169 = vector.load %arg6[%c12_92, %c0_93] : memref<36x512xf32, #tpu.memory_space<vmem>>, vector<4x512xf32>
    tpu.vector_store %arg6[%c12_92, %c0_93], %168 {strides = array<i32>} : memref<36x512xf32, #tpu.memory_space<vmem>>, vector<4x512xf32>,
    %c0_94 = arith.constant 0 : index
    %c128_95 = arith.constant 128 : index
    %170 = vector.load %arg5[%c0_94, %c128_95] : memref<4x768xf32, #tpu.memory_space<vmem>>, vector<4x512xf32>
    %c16_96 = arith.constant 16 : index
    %c0_97 = arith.constant 0 : index
    %171 = vector.load %arg6[%c16_96, %c0_97] : memref<36x512xf32, #tpu.memory_space<vmem>>, vector<4x512xf32>
    tpu.vector_store %arg6[%c16_96, %c0_97], %170 {strides = array<i32>} : memref<36x512xf32, #tpu.memory_space<vmem>>, vector<4x512xf32>,
    %c0_98 = arith.constant 0 : index
    %c129_99 = arith.constant 129 : index
    %172 = vector.load %arg5[%c0_98, %c129_99] : memref<4x768xf32, #tpu.memory_space<vmem>>, vector<4x512xf32>
    %cst_100 = arith.constant 0.000000e+00 : f32
    %173 = vector.shape_cast %14 : vector<1x512xi1> to vector<1x512xi1>
    %174 = vector.broadcast %173 : vector<1x512xi1> to vector<4x512xi1>
    %175 = vector.broadcast %cst_100 : f32 to vector<4x512xf32>
    %176 = arith.select %174, %172, %175 : vector<4x512xi1>, vector<4x512xf32>
    %c20_101 = arith.constant 20 : index
    %c0_102 = arith.constant 0 : index
    %177 = vector.load %arg6[%c20_101, %c0_102] : memref<36x512xf32, #tpu.memory_space<vmem>>, vector<4x512xf32>
    tpu.vector_store %arg6[%c20_101, %c0_102], %176 {strides = array<i32>} : memref<36x512xf32, #tpu.memory_space<vmem>>, vector<4x512xf32>,
    %c0_103 = arith.constant 0 : index
    %c143_104 = arith.constant 143 : index
    %178 = vector.load %arg5[%c0_103, %c143_104] : memref<4x768xf32, #tpu.memory_space<vmem>>, vector<4x512xf32>
    %cst_105 = arith.constant 0.000000e+00 : f32
    %179 = vector.shape_cast %17 : vector<1x512xi1> to vector<1x512xi1>
    %180 = vector.broadcast %179 : vector<1x512xi1> to vector<4x512xi1>
    %181 = vector.broadcast %cst_105 : f32 to vector<4x512xf32>
    %182 = arith.select %180, %178, %181 : vector<4x512xi1>, vector<4x512xf32>
    %c24_106 = arith.constant 24 : index
    %c0_107 = arith.constant 0 : index
    %183 = vector.load %arg6[%c24_106, %c0_107] : memref<36x512xf32, #tpu.memory_space<vmem>>, vector<4x512xf32>
    tpu.vector_store %arg6[%c24_106, %c0_107], %182 {strides = array<i32>} : memref<36x512xf32, #tpu.memory_space<vmem>>, vector<4x512xf32>,
    %c0_108 = arith.constant 0 : index
    %c144_109 = arith.constant 144 : index
    %184 = vector.load %arg5[%c0_108, %c144_109] : memref<4x768xf32, #tpu.memory_space<vmem>>, vector<4x512xf32>
    %cst_110 = arith.constant 0.000000e+00 : f32
    %185 = vector.shape_cast %10 : vector<1x512xi1> to vector<1x512xi1>
    %186 = vector.broadcast %185 : vector<1x512xi1> to vector<4x512xi1>
    %187 = vector.broadcast %cst_110 : f32 to vector<4x512xf32>
    %188 = arith.select %186, %184, %187 : vector<4x512xi1>, vector<4x512xf32>
    %c28_111 = arith.constant 28 : index
    %c0_112 = arith.constant 0 : index
    %189 = vector.load %arg6[%c28_111, %c0_112] : memref<36x512xf32, #tpu.memory_space<vmem>>, vector<4x512xf32>
    tpu.vector_store %arg6[%c28_111, %c0_112], %188 {strides = array<i32>} : memref<36x512xf32, #tpu.memory_space<vmem>>, vector<4x512xf32>,
    %c0_113 = arith.constant 0 : index
    %c145_114 = arith.constant 145 : index
    %190 = vector.load %arg5[%c0_113, %c145_114] : memref<4x768xf32, #tpu.memory_space<vmem>>, vector<4x512xf32>
    %cst_115 = arith.constant 0.000000e+00 : f32
    %191 = vector.shape_cast %18 : vector<1x512xi1> to vector<1x512xi1>
    %192 = vector.broadcast %191 : vector<1x512xi1> to vector<4x512xi1>
    %193 = vector.broadcast %cst_115 : f32 to vector<4x512xf32>
    %194 = arith.select %192, %190, %193 : vector<4x512xi1>, vector<4x512xf32>
    %c32_116 = arith.constant 32 : index
    %c0_117 = arith.constant 0 : index
    %195 = vector.load %arg6[%c32_116, %c0_117] : memref<36x512xf32, #tpu.memory_space<vmem>>, vector<4x512xf32>
    tpu.vector_store %arg6[%c32_116, %c0_117], %194 {strides = array<i32>} : memref<36x512xf32, #tpu.memory_space<vmem>>, vector<4x512xf32>,
    %c1_118 = arith.constant 1 : index
    %c0_119 = arith.constant 0 : index
    %c0_120 = arith.constant 0 : index
    %196 = vector.load %arg2[%c1_118, %c0_119, %c0_120] : memref<2x12x36xf32, #tpu.memory_space<vmem>>, vector<1x12x36xf32>
    %197 = vector.shape_cast %196 : vector<1x12x36xf32> to vector<12x36xf32>
    %c0_121 = arith.constant 0 : index
    %c0_122 = arith.constant 0 : index
    %198 = vector.load %arg6[%c0_121, %c0_122] : memref<36x512xf32, #tpu.memory_space<vmem>>, vector<36x512xf32>
    %cst_123 = arith.constant dense<0.000000e+00> : vector<12x512xf32>
    %199 = tpu.matmul %197, %198, %cst_123 {dimension_numbers = #tpu.dot_dimension_numbers<[1], [0], [0], [1], [0, 0, 1, 1], [], []>} : vector<12x36xf32>, vector<36x512xf32>, vector<12x512xf32> -> vector<12x512xf32>
    %c1_124 = arith.constant 1 : index
    %c0_125 = arith.constant 0 : index
    %c0_126 = arith.constant 0 : index
    %c0_127 = arith.constant 0 : index
    %200 = vector.load %arg3[%c1_124, %c0_125, %c0_126, %c0_127] : memref<2x6x12x1xf32, #tpu.memory_space<vmem>>, vector<1x1x12x1xf32>
    %201 = vector.shape_cast %200 : vector<1x1x12x1xf32> to vector<12x1xf32>
    %cst_128 = arith.constant 5.000000e-01 : f32
    %202 = vector.broadcast %cst_128 : f32 to vector<12x1xf32>
    %203 = arith.cmpf ogt, %201, %202 : vector<12x1xf32>
    %cst_129 = arith.constant 1.000000e+00 : f32
    %204 = vector.shape_cast %203 : vector<12x1xi1> to vector<12x1xi1>
    %205 = vector.broadcast %204 : vector<12x1xi1> to vector<12x512xi1>
    %206 = vector.broadcast %cst_129 : f32 to vector<12x512xf32>
    %207 = arith.select %205, %199, %206 : vector<12x512xi1>, vector<12x512xf32>
    %208 = arith.mulf %199, %199 : vector<12x512xf32>
    %c1_130 = arith.constant 1 : index
    %c1_131 = arith.constant 1 : index
    %c0_132 = arith.constant 0 : index
    %c0_133 = arith.constant 0 : index
    %209 = vector.load %arg3[%c1_130, %c1_131, %c0_132, %c0_133] : memref<2x6x12x1xf32, #tpu.memory_space<vmem>>, vector<1x1x12x1xf32>
    %210 = vector.shape_cast %209 : vector<1x1x12x1xf32> to vector<12x1xf32>
    %cst_134 = arith.constant 5.000000e-01 : f32
    %211 = vector.broadcast %cst_134 : f32 to vector<12x1xf32>
    %212 = arith.cmpf ogt, %210, %211 : vector<12x1xf32>
    %cst_135 = arith.constant 1.000000e+00 : f32
    %213 = vector.shape_cast %212 : vector<12x1xi1> to vector<12x1xi1>
    %214 = vector.broadcast %213 : vector<12x1xi1> to vector<12x512xi1>
    %215 = vector.broadcast %cst_135 : f32 to vector<12x512xf32>
    %216 = arith.select %214, %208, %215 : vector<12x512xi1>, vector<12x512xf32>
    %217 = arith.mulf %207, %216 : vector<12x512xf32>
    %218 = arith.mulf %208, %208 : vector<12x512xf32>
    %c1_136 = arith.constant 1 : index
    %c2_137 = arith.constant 2 : index
    %c0_138 = arith.constant 0 : index
    %c0_139 = arith.constant 0 : index
    %219 = vector.load %arg3[%c1_136, %c2_137, %c0_138, %c0_139] : memref<2x6x12x1xf32, #tpu.memory_space<vmem>>, vector<1x1x12x1xf32>
    %220 = vector.shape_cast %219 : vector<1x1x12x1xf32> to vector<12x1xf32>
    %cst_140 = arith.constant 5.000000e-01 : f32
    %221 = vector.broadcast %cst_140 : f32 to vector<12x1xf32>
    %222 = arith.cmpf ogt, %220, %221 : vector<12x1xf32>
    %cst_141 = arith.constant 1.000000e+00 : f32
    %223 = vector.shape_cast %222 : vector<12x1xi1> to vector<12x1xi1>
    %224 = vector.broadcast %223 : vector<12x1xi1> to vector<12x512xi1>
    %225 = vector.broadcast %cst_141 : f32 to vector<12x512xf32>
    %226 = arith.select %224, %218, %225 : vector<12x512xi1>, vector<12x512xf32>
    %227 = arith.mulf %217, %226 : vector<12x512xf32>
    %228 = arith.mulf %218, %218 : vector<12x512xf32>
    %c1_142 = arith.constant 1 : index
    %c3_143 = arith.constant 3 : index
    %c0_144 = arith.constant 0 : index
    %c0_145 = arith.constant 0 : index
    %229 = vector.load %arg3[%c1_142, %c3_143, %c0_144, %c0_145] : memref<2x6x12x1xf32, #tpu.memory_space<vmem>>, vector<1x1x12x1xf32>
    %230 = vector.shape_cast %229 : vector<1x1x12x1xf32> to vector<12x1xf32>
    %cst_146 = arith.constant 5.000000e-01 : f32
    %231 = vector.broadcast %cst_146 : f32 to vector<12x1xf32>
    %232 = arith.cmpf ogt, %230, %231 : vector<12x1xf32>
    %cst_147 = arith.constant 1.000000e+00 : f32
    %233 = vector.shape_cast %232 : vector<12x1xi1> to vector<12x1xi1>
    %234 = vector.broadcast %233 : vector<12x1xi1> to vector<12x512xi1>
    %235 = vector.broadcast %cst_147 : f32 to vector<12x512xf32>
    %236 = arith.select %234, %228, %235 : vector<12x512xi1>, vector<12x512xf32>
    %237 = arith.mulf %227, %236 : vector<12x512xf32>
    %238 = vector.extract_strided_slice %237 {offsets = [0, 0], sizes = [4, 512], strides = [1, 1]} : vector<12x512xf32> to vector<4x512xf32>
    %239 = vector.extract_strided_slice %237 {offsets = [4, 0], sizes = [4, 512], strides = [1, 1]} : vector<12x512xf32> to vector<4x512xf32>
    %240 = arith.mulf %238, %239 : vector<4x512xf32>
    %241 = vector.extract_strided_slice %237 {offsets = [8, 0], sizes = [4, 512], strides = [1, 1]} : vector<12x512xf32> to vector<4x512xf32>
    %242 = arith.mulf %240, %241 : vector<4x512xf32>
    %c1_148 = arith.constant 1 : index
    %c4_149 = arith.constant 4 : index
    %c0_150 = arith.constant 0 : index
    %c0_151 = arith.constant 0 : index
    %243 = vector.load %arg3[%c1_148, %c4_149, %c0_150, %c0_151] : memref<2x6x12x1xf32, #tpu.memory_space<vmem>>, vector<1x1x12x1xf32>
    %244 = vector.shape_cast %243 : vector<1x1x12x1xf32> to vector<12x1xf32>
    %245 = vector.extract_strided_slice %244 {offsets = [0, 0], sizes = [4, 1], strides = [1, 1]} : vector<12x1xf32> to vector<4x1xf32>
    %c1_152 = arith.constant 1 : index
    %c5_153 = arith.constant 5 : index
    %c0_154 = arith.constant 0 : index
    %c0_155 = arith.constant 0 : index
    %246 = vector.load %arg3[%c1_152, %c5_153, %c0_154, %c0_155] : memref<2x6x12x1xf32, #tpu.memory_space<vmem>>, vector<1x1x12x1xf32>
    %247 = vector.shape_cast %246 : vector<1x1x12x1xf32> to vector<12x1xf32>
    %248 = vector.extract_strided_slice %247 {offsets = [0, 0], sizes = [4, 1], strides = [1, 1]} : vector<12x1xf32> to vector<4x1xf32>
    %cst_156 = arith.constant dense<0.000000e+00> : vector<4xf32>
    %249 = vector.multi_reduction <add>, %242, %cst_156 [1] : vector<4x512xf32> to vector<4xf32>
    %250 = vector.shape_cast %249 : vector<4xf32> to vector<4x1xf32>
    %cst_157 = arith.constant 0.001953125 : f32
    %251 = vector.broadcast %cst_157 : f32 to vector<4x1xf32>
    %252 = arith.mulf %250, %251 : vector<4x1xf32>
    %253 = vector.broadcast %252 : vector<4x1xf32> to vector<4x512xf32>
    %254 = arith.subf %242, %253 : vector<4x512xf32>
    %255 = arith.mulf %254, %254 : vector<4x512xf32>
    %cst_158 = arith.constant dense<0.000000e+00> : vector<4xf32>
    %256 = vector.multi_reduction <add>, %255, %cst_158 [1] : vector<4x512xf32> to vector<4xf32>
    %257 = vector.shape_cast %256 : vector<4xf32> to vector<4x1xf32>
    %cst_159 = arith.constant 0.001953125 : f32
    %258 = vector.broadcast %cst_159 : f32 to vector<4x1xf32>
    %259 = arith.mulf %257, %258 : vector<4x1xf32>
    %cst_160 = arith.constant 9.99999974E-6 : f32
    %260 = vector.broadcast %cst_160 : f32 to vector<4x1xf32>
    %261 = arith.addf %259, %260 : vector<4x1xf32>
    %262 = math.rsqrt %261 : vector<4x1xf32>
    %263 = arith.mulf %245, %262 : vector<4x1xf32>
    %264 = vector.broadcast %263 : vector<4x1xf32> to vector<4x512xf32>
    %265 = arith.mulf %254, %264 : vector<4x512xf32>
    %266 = vector.broadcast %248 : vector<4x1xf32> to vector<4x512xf32>
    %267 = arith.addf %265, %266 : vector<4x512xf32>
    %c0_161 = arith.constant 0 : index
    %c0_162 = arith.constant 0 : index
    %268 = vector.load %arg1[%c0_161, %c0_162] : memref<4x512xf32, #tpu.memory_space<vmem>>, vector<4x512xf32>
    %269 = arith.addf %267, %268 : vector<4x512xf32>
    %cst_163 = arith.constant 0.000000e+00 : f32
    %270 = vector.broadcast %cst_163 : f32 to vector<4x512xf32>
    %271 = arith.maximumf %269, %270 : vector<4x512xf32>
    %c0_164 = arith.constant 0 : index
    %c0_165 = arith.constant 0 : index
    %272 = vector.load %arg4[%c0_164, %c0_165] : memref<4x512xf32, #tpu.memory_space<vmem>>, vector<4x512xf32>
    tpu.vector_store %arg4[%c0_164, %c0_165], %271 {strides = array<i32>} : memref<4x512xf32, #tpu.memory_space<vmem>>, vector<4x512xf32>,
    return
  }
  func.func @transform_0(%arg0: i32) -> (i32, i32) {
    %c0_i32 = arith.constant 0 : i32
    %c0_i32_0 = arith.constant 0 : i32
    %c0_i32_1 = arith.constant 0 : i32
    return %c0_i32, %c0_i32_0 : i32, i32
  }
  func.func @transform_1(%arg0: i32) -> (i32, i32, i32) {
    %c0_i32 = arith.constant 0 : i32
    %c0_i32_0 = arith.constant 0 : i32
    %c0_i32_1 = arith.constant 0 : i32
    %c0_i32_2 = arith.constant 0 : i32
    return %c0_i32, %c0_i32_0, %c0_i32_1 : i32, i32, i32
  }
  func.func @transform_2(%arg0: i32) -> (i32, i32, i32, i32) {
    %c0_i32 = arith.constant 0 : i32
    %c0_i32_0 = arith.constant 0 : i32
    %c0_i32_1 = arith.constant 0 : i32
    %c0_i32_2 = arith.constant 0 : i32
    %c0_i32_3 = arith.constant 0 : i32
    return %c0_i32, %c0_i32_0, %c0_i32_1, %c0_i32_2 : i32, i32, i32, i32
  }
  func.func @transform_3(%arg0: i32) -> (i32, i32) {
    %c0_i32 = arith.constant 0 : i32
    %c0_i32_0 = arith.constant 0 : i32
    %c0_i32_1 = arith.constant 0 : i32
    return %c0_i32, %c0_i32_0 : i32, i32
  }
}

</mosaic_0001>

<bundles_post_ra>
// kernel: tpu_custom_call.1
= control target key start
LH: loop header
LB: loop body
LE: loop exit
PB: predicated region body
PF: predicated region fallthrough
CT: control target
= control target key end

     0   :  { %s2692_s0 = inlined_call_operand.vmem [shape: f32[4,512], index: 0, kind: input, shape index: {}]   ;;  %s2693_s1 = inlined_call_operand.vmem [shape: f32[2,12,36], index: 1, kind: input, shape index: {}]   ;;  %s2694_s2 = inlined_call_operand.vmem [shape: f32[2,6,12,1], index: 2, kind: input, shape index: {}]   ;;  %s2695_s3 = inlined_call_operand.hbm [shape: f32[4,512], index: 3, kind: output, shape index: {}]  }
   0x1   :  { %v1843_v0 = vld [vmem:[%s2692_s0] sm:$0xff]  ;;  %v1848_v1 = vld [vmem:[%s2692_s0 + $0x8] sm:$0xff] }
   0x2   :  { %8 = vsyncpa [#allocation5], 0  ;;  %66 = vst [vmem:[#allocation2 + $0x4] sm:$0xff] %v1843_v0  ;;  %s1810_s16 = smov 17   ;;  %s1811_s17 = smov 16   ;;  %v15_v55 = vlaneseq  ;;  %vm2697_vm2 = vcmask 138240  }
   0x3   :  { %67 = vst [vmem:[#allocation2 + $0xc] sm:$0xff] %v1848_v1  ;;  %s1812_s18 = smov 15   ;;  %v317_v23 = vld [vmem:[#allocation2 + $0x14] sm:$0xf]  ;;  %s1813_s19 = smov 1   ;;  %vm2701_vm4 = vcmask 130048  }
   0x4   :  { %v380_v29 = vld [vmem:[#allocation2 + $0x14] sm:$0xf]  ;;  %s1814_s20 = smov 127   ;;  %s1815_s21 = smov 113   ;;  %v1914_v57 = vand.u32 127, %v15_v55  ;;  %vm2699_vm7 = vcmask 121856  }
   0x5   :  { %v431_v35 = vld [vmem:[#allocation2 + $0x14] sm:$0xf]  ;;  %s1816_s22 = smov 112   ;;  %s1817_s23 = smov 111   ;;  %vm2704_vm9 = vcmask 7168   ;;  %vm2698_vm10 = vcmask 1039360  }
   0x6   :  { %v494_v41 = vld [vmem:[#allocation2 + $0x14] sm:$0xf]  ;;  %v18_v58 = vadd.s32 256, %v1914_v57  ;;  %v19_v63 = vadd.s32 384, %v1914_v57 }
   0x8   :  { %v26_v60 = vshra.s32 %v18_v58, 4  ;;  %v22_v61 = vand.u32 15, %v18_v58 }
   0x9   :  { %v68_v4 = vld [vmem:[#allocation2] sm:$0xff] }
   0xa   :  { %v69_v2 = vld [vmem:[#allocation2 + $0x8] sm:$0xff]  ;;  %v70_v3 = vld [vmem:[#allocation2 + $0x10] sm:$0xf]  ;;  %82 = vst [vmem:[#allocation1] ss:$2 sm:$0xff] %v68_v4  ;;  %v1926_v62 = vand.u32 15, %v26_v60 }
   0xb   :  { %84 = vst [vmem:[#allocation1 + $0x10] ss:$2 sm:$0xff] %v69_v2  ;;  %v121_v5 = vld [vmem:[#allocation2 + $0x10] sm:$0xf]  ;;  %vm1932_vm1 = vcmp.ge.s32.totalorder %v22_v61, 1  ;;  %vm1971_vm6 = vcmp.le.s32.totalorder %v22_v61, 14 }
   0xc   :  { %86 = vst [vmem:[#allocation1 + $0x20] ss:$2 sm:$0xff] %v70_v3  ;;  %v184_v11 = vld [vmem:[#allocation2 + $0x10] sm:$0xf]  ;;  %vm2696_vm0 = vcmp.ge.s32.totalorder %v1926_v62, 1  ;;  %v27_v3 = vshra.s32 %v19_v63, 4 }
   0xd   :  { %v235_v17 = vld [vmem:[#allocation2 + $0x10] sm:$0xf]  ;;  %vm1944_vm3 = vmand %vm2696_vm0, %vm1932_vm1 }
   0xe   :  { %vm1979_vm8 = vmand %vm2696_vm0, %vm1971_vm6 }
  0x11   :  { %v1856_v9 = vld.sshfl [vmem:[#allocation1] sm:$0xff pattern:$0x75316420]  ;;  %v1858_v10 = vld.sshfl [vmem:[#allocation1 + $0x8] sm:$0xff pattern:$0x75316420] }
  0x12   :  { %v90_v6 = vld.sshfl [vmem:[#allocation1 + $0x18] sm:$0xff pattern:$0x75316420]  ;;  %v89_v7 = vld.sshfl [vmem:[#allocation1 + $0x10] sm:$0xff pattern:$0x75316420] }
  0x13   :  { %98 = vrot.lane.b32.xlu1 %v90_v6, %s1810_s16  ;;  %96 = vrot.lane.b32.xlu0 %v89_v7, %s1810_s16  ;;  %135 = vst [vmem:[#allocation1 + $0x10] ss:$2 sm:$0xff] %v69_v2  ;;  %v1854_v8 = vld.sshfl [vmem:[#allocation1 + $0x20] sm:$0xff pattern:$0x75316420] }
  0x14   :  { %137 = vst [vmem:[#allocation1 + $0x20] ss:$2 sm:$0xff] %v121_v5 }
  0x15   :  { %133 = vst [vmem:[#allocation1] ss:$2 sm:$0xff] %v68_v4 }
  0x1a   :  { %v141_v12 = vld.sshfl [vmem:[#allocation1 + $0x18] sm:$0xff pattern:$0x75316420]  ;;  %v140_v13 = vld.sshfl [vmem:[#allocation1 + $0x10] sm:$0xff pattern:$0x75316420] }
  0x1b   :  { %149 = vrot.lane.b32.xlu1 %v141_v12, %s1811_s17  ;;  %147 = vrot.lane.b32.xlu0 %v140_v13, %s1811_s17  ;;  %v142_v14 = vld.sshfl [vmem:[#allocation1 + $0x20] sm:$0xff pattern:$0x75316420]  ;;  %198 = vst [vmem:[#allocation1 + $0x10] ss:$2 sm:$0xff] %v69_v2 }
  0x1c   :  { %151 = vrot.lane.b32.xlu2 %v142_v14, %s1811_s17  ;;  %200 = vst [vmem:[#allocation1 + $0x20] ss:$2 sm:$0xff] %v184_v11  ;;  %v1863_v15 = vld.sshfl [vmem:[#allocation1] sm:$0xff pattern:$0x75316420] }
  0x1d   :  { %v1865_v16 = vld.sshfl [vmem:[#allocation1 + $0x8] sm:$0xff pattern:$0x75316420] }
  0x1e   :  { %196 = vst [vmem:[#allocation1] ss:$2 sm:$0xff] %v68_v4 }
  0x22   :  { %v204_v18 = vld.sshfl [vmem:[#allocation1 + $0x18] sm:$0xff pattern:$0x75316420]  ;;  %v203_v19 = vld.sshfl [vmem:[#allocation1 + $0x10] sm:$0xff pattern:$0x75316420] }
  0x23   :  { %212 = vrot.lane.b32.xlu0 %v204_v18, %s1812_s18  ;;  %249 = vst [vmem:[#allocation1 + $0x10] ss:$2 sm:$0xff] %v69_v2  ;;  %v1868_v20 = vld.sshfl [vmem:[#allocation1 + $0x20] sm:$0xff pattern:$0x75316420]  ;;  %v2738_v18 = vmov 0 }
  0x24   :  { %210 = vrot.lane.b32.xlu2 %v203_v19, %s1812_s18  ;;  %251 = vst [vmem:[#allocation1 + $0x20] ss:$2 sm:$0xff] %v235_v17  ;;  %v2739_v18 = vsel %vm1971_vm6, 4294967295, %v2738_v18 }
  0x25   :  { %v1871_v21 = vld.sshfl [vmem:[#allocation1] sm:$0xff pattern:$0x75316420]  ;;  %v1873_v22 = vld.sshfl [vmem:[#allocation1 + $0x8] sm:$0xff pattern:$0x75316420] }
  0x26   :  { %247 = vst [vmem:[#allocation1] ss:$2 sm:$0xff] %v68_v4 }
  0x2a   :  { %v254_v24 = vld.sshfl [vmem:[#allocation1 + $0x10] sm:$0xff pattern:$0x75316420]  ;;  %v255_v25 = vld.sshfl [vmem:[#allocation1 + $0x18] sm:$0xff pattern:$0x75316420] }
  0x2b   :  { %261 = vrot.lane.b32.xlu1 %v254_v24, %s1813_s19  ;;  %v256_v26 = vld.sshfl [vmem:[#allocation1 + $0x20] sm:$0xff pattern:$0x75316420]  ;;  %302 = vst [vmem:[#allocation1 + $0x10] ss:$2 sm:$0xff] %v1848_v1 }
  0x2c   :  { %333 = vst [vmem:[#allocation1 + $0x20] ss:$2 sm:$0xff] %v317_v23  ;;  %263 = vrot.lane.b32.xlu2 %v255_v25, %s1813_s19 }
  0x2d   :  { %v252_v27 = vld.sshfl [vmem:[#allocation1] sm:$0xff pattern:$0x75316420]  ;;  %v1878_v28 = vld.sshfl [vmem:[#allocation1 + $0x8] sm:$0xff pattern:$0x75316420] }
  0x2e   :  { %300 = vst [vmem:[#allocation1] ss:$2 sm:$0xff] %v1843_v0 }
  0x32   :  { %v305_v30 = vld.sshfl [vmem:[#allocation1 + $0x10] sm:$0xff pattern:$0x75316420]  ;;  %v306_v31 = vld.sshfl [vmem:[#allocation1 + $0x18] sm:$0xff pattern:$0x75316420] }
  0x33   :  { %v338_v32 = vld.sshfl [vmem:[#allocation1 + $0x20] sm:$0xff pattern:$0x75316420]  ;;  %265 = vrot.lane.b32.xlu1 %v256_v26, %s1813_s19  ;;  %331 = vst [vmem:[#allocation1 + $0x10] ss:$2 sm:$0xff] %v1848_v1 }
  0x34   :  { %347 = vrot.lane.b32.xlu0 %v338_v32, %s1814_s20  ;;  %396 = vst [vmem:[#allocation1 + $0x20] ss:$2 sm:$0xff] %v380_v29  ;;  %v23_v32 = vand.u32 15, %v19_v63  ;;  %v2750_v63 = vmov 0 }
  0x35   :  { %313 = vst [vmem:[#allocation3 + $0x28] sm:$0xf] %v305_v30  ;;  %v303_v33 = vld.sshfl [vmem:[#allocation1] sm:$0xff pattern:$0x75316420] }
  0x36   :  { %314 = vst [vmem:[#allocation3 + $0x40] sm:$0xf] %v306_v31  ;;  %v304_v34 = vld.sshfl [vmem:[#allocation1 + $0x8] sm:$0xff pattern:$0x75316420]  ;;  %vm1999_vm11 = vcmp.ge.s32.totalorder %v23_v32, 1 }
  0x37   :  { %329 = vst [vmem:[#allocation1] ss:$2 sm:$0xff] %v1843_v0  ;;  %vm2003_vm12 = vcmp.le.s32.totalorder %v23_v32, 14 }
  0x38   :  { %311 = vst [vmem:[#allocation3 + $0x8] sm:$0xf] %v303_v33 }
  0x39   :  { %312 = vst [vmem:[#allocation3 + $0x88] sm:$0xf] %v304_v34 }
  0x3a   :  { %v336_v36 = vld.sshfl [vmem:[#allocation1 + $0x10] sm:$0xff pattern:$0x75316420]  ;;  %v337_v37 = vld.sshfl [vmem:[#allocation1 + $0x18] sm:$0xff pattern:$0x75316420] }
  0x3b   :  { %v401_v38 = vld.sshfl [vmem:[#allocation1 + $0x20] sm:$0xff pattern:$0x75316420]  ;;  %343 = vrot.lane.b32.xlu2 %v336_v36, %s1814_s20  ;;  %394 = vst [vmem:[#allocation1 + $0x10] ss:$2 sm:$0xff] %v1848_v1 }
  0x3c   :  { %410 = vrot.lane.b32.xlu1 %v401_v38, %s1815_s21  ;;  %447 = vst [vmem:[#allocation1 + $0x20] ss:$2 sm:$0xff] %v431_v35 }
  0x3e   :  { %v335_v39 = vld.sshfl [vmem:[#allocation1 + $0x8] sm:$0xff pattern:$0x75316420]  ;;  %v334_v40 = vld.sshfl [vmem:[#allocation1] sm:$0xff pattern:$0x75316420] }
  0x3f   :  { %341 = vrot.lane.b32.xlu0 %v335_v39, %s1814_s20  ;;  %392 = vst [vmem:[#allocation1] ss:$2 sm:$0xff] %v1843_v0 }
  0x42   :  { %v400_v42 = vld.sshfl [vmem:[#allocation1 + $0x18] sm:$0xff pattern:$0x75316420]  ;;  %v399_v43 = vld.sshfl [vmem:[#allocation1 + $0x10] sm:$0xff pattern:$0x75316420] }
  0x43   :  { %345 = vrot.lane.b32.xlu2 %v337_v37, %s1814_s20  ;;  %445 = vst [vmem:[#allocation1 + $0x10] ss:$2 sm:$0xff] %v1848_v1  ;;  %v452_v44 = vld.sshfl [vmem:[#allocation1 + $0x20] sm:$0xff pattern:$0x75316420] }
  0x44   :  { %408 = vrot.lane.b32.xlu1 %v400_v42, %s1815_s21  ;;  %510 = vst [vmem:[#allocation1 + $0x20] ss:$2 sm:$0xff] %v494_v41 }
  0x46   :  { %v397_v45 = vld.sshfl [vmem:[#allocation1] sm:$0xff pattern:$0x75316420]  ;;  %v398_v46 = vld.sshfl [vmem:[#allocation1 + $0x8] sm:$0xff pattern:$0x75316420] }
  0x47   :  { %406 = vrot.lane.b32.xlu0 %v399_v43, %s1815_s21  ;;  %443 = vst [vmem:[#allocation1] ss:$2 sm:$0xff] %v1843_v0  ;;  %v17_v43 = vadd.s32 128, %v1914_v57 }
  0x4a   :  { %v450_v47 = vld.sshfl [vmem:[#allocation1 + $0x10] sm:$0xff pattern:$0x75316420]  ;;  %v451_v48 = vld.sshfl [vmem:[#allocation1 + $0x18] sm:$0xff pattern:$0x75316420] }
  0x4b   :  { %339 = vrot.lane.b32.xlu2 %v334_v40, %s1814_s20  ;;  %508 = vst [vmem:[#allocation1 + $0x10] ss:$2 sm:$0xff] %v1848_v1  ;;  %v515_v52 = vld.sshfl [vmem:[#allocation1 + $0x20] sm:$0xff pattern:$0x75316420] }
  0x4c   :  { %402 = vrot.lane.b32.xlu1 %v397_v45, %s1815_s21  ;;  %v20_v45 = vand.u32 15, %v1914_v57 }
  0x4e   :  { %v449_v49 = vld.sshfl [vmem:[#allocation1 + $0x8] sm:$0xff pattern:$0x75316420]  ;;  %v448_v50 = vld.sshfl [vmem:[#allocation1] sm:$0xff pattern:$0x75316420] }
  0x4f   :  { %457 = vrot.lane.b32.xlu0 %v450_v47, %s1816_s22  ;;  %506 = vst [vmem:[#allocation1] ss:$2 sm:$0xff] %v1843_v0  ;;  %v2734_v0 = vmov 0  ;;  %vm2015_vm13 = vcmp.le.s32.totalorder %v20_v45, 14 }
  0x50   :  { %v2735_v0 = vsel %vm1932_vm1, 4294967295, %v2734_v0 }
  0x52   :  { %v513_v51 = vld.sshfl [vmem:[#allocation1 + $0x10] sm:$0xff pattern:$0x75316420]  ;;  %v514_v53 = vld.sshfl [vmem:[#allocation1 + $0x18] sm:$0xff pattern:$0x75316420] }
  0x53   :  { %461 = vrot.lane.b32.xlu2 %v452_v44, %s1816_s22 }
  0x54   :  { %257 = vrot.lane.b32.xlu1 %v252_v27, %s1813_s19 }
  0x56   :  { %v511_v54 = vld.sshfl [vmem:[#allocation1] sm:$0xff pattern:$0x75316420]  ;;  %v512_v56 = vld.sshfl [vmem:[#allocation1 + $0x8] sm:$0xff pattern:$0x75316420] }
  0x57   :  { %459 = vrot.lane.b32.xlu0 %v451_v48, %s1816_s22  ;;  %v25_v48 = vshra.s32 %v17_v43, 4 }
  0x5b   :  { %404 = vrot.lane.b32.xlu2 %v398_v46, %s1815_s21  ;;  %v21_v46 = vand.u32 15, %v17_v43 }
  0x5c   :  { %520 = vrot.lane.b32.xlu1 %v513_v51, %s1817_s23  ;;  %v2748_v51 = vmov 0 }
  0x5d   :  { %vm2019_vm14 = vcmp.le.s32.totalorder %v21_v46, 14 }
  0x5e   :  { %v2749_v51 = vsel %vm2019_vm14, 4294967295, %v2748_v51 }
  0x5f   :  { %524 = vrot.lane.b32.xlu0 %v515_v52, %s1817_s23 }
  0x63   :  { %453 = vrot.lane.b32.xlu2 %v448_v50, %s1816_s22 }
  0x64   :  { %522 = vrot.lane.b32.xlu1 %v514_v53, %s1817_s23  ;;  %v2023_v53 = vand.u32 15, %v25_v48  ;;  %v2767_v48 = vmov 0 }
  0x67   :  { %455 = vrot.lane.b32.xlu0 %v449_v49, %s1816_s22 }
  0x6b   :  { %259 = vrot.lane.b32.xlu2 %v1878_v28, %s1813_s19 }
  0x6c   :  { %516 = vrot.lane.b32.xlu1 %v511_v54, %s1817_s23 }
  0x6f   :  { %214 = vrot.lane.b32.xlu0 %v1868_v20, %s1812_s18 }
  0x73   :  { %518 = vrot.lane.b32.xlu2 %v512_v56, %s1817_s23  ;;  %v24_v56 = vshra.s32 %v1914_v57, 4 }
  0x74   :  { %143 = vrot.lane.b32.xlu1 %v1863_v15, %s1811_s17 }
  0x76   :  { %v152_v59 = vpop.permute.xlu2 %151 }
  0x77   :  { %100 = vrot.lane.b32.xlu0 %v1854_v8, %s1810_s16  ;;  %v1959_v8 = vand.u32 15, %v27_v3 }
  0x79   :  { %vm2700_vm5 = vcmp.ge.s32.totalorder %v1959_v8, 1  ;;  %vm2702_vm15 = vcmp.le.s32.totalorder %v1959_v8, 14 }
  0x7b   :  { %145 = vrot.lane.b32.xlu2 %v1865_v16, %s1811_s17 }
  0x7c   :  { %208 = vrot.lane.b32.xlu1 %v1873_v22, %s1812_s18 }
  0x7e   :  { %v1936_v1 = vpop.permute.xlu2 %210 }
  0x7f   :  { %206 = vrot.lane.b32.xlu0 %v1871_v21, %s1812_s18 }
  0x83   :  { %92 = vrot.lane.b32.xlu2 %v1856_v9, %s1810_s16 }
  0x85   :  { %v1948_v4 = vpop.permute.xlu1 %98  ;;  %v1950_v5 = vpop.permute.xlu0 %96 }
  0x86   :  { %v105_v6 = vsel %vm2697_vm2, %v1950_v5, %v1948_v4  ;;  %v264_v9 = vpop.permute.xlu2 %263  ;;  %vm2703_vm2 = vcmp.le.s32.totalorder %v1926_v62, 14 }
  0x87   :  { %94 = vrot.lane.b32.xlu0 %v1858_v10, %s1810_s16  ;;  %v113_v7 = vsel %vm1944_vm3, %v105_v6, 0.0 }
  0x88   :  { %117 = vst [vmem:[#allocation3 + $0x50] sm:$0xf] %v113_v7  ;;  %v2047_v7 = vand.u32 15, %v24_v56  ;;  %v2772_v56 = vmov 0 }
  0x8d   :  { %v150_v11 = vpop.permute.xlu1 %149  ;;  %v1962_v12 = vpop.permute.xlu0 %147 }
  0x8e   :  { %v157_v13 = vsel %vm2701_vm4, %v150_v11, %v152_v59  ;;  %v156_v14 = vsel %vm2701_vm4, %v1962_v12, %v150_v11  ;;  %vm2054_vm4 = vmand %vm2703_vm2, %vm1932_vm1  ;;  %v2754_v11 = vmov 0  ;;  %vm2710_vm2 = vcmp.le.s32.totalorder %v2047_v7, 14 }
  0x8f   :  { %v165_v10 = vsel %vm2700_vm5, %v157_v13, 0.0  ;;  %v164_v15 = vsel %vm2696_vm0, %v156_v14, 0.0  ;;  %vm2709_vm0 = vcmask 924672   ;;  %vm2043_vm5 = vcmp.ge.s32.totalorder %v21_v46, 1 }
  0x90   :  { %v173_v16 = vrot.slane %v165_v10, 4  ;;  %v172_v17 = vrot.slane %v164_v15, 4  ;;  %v2755_v11 = vsel %vm2054_vm4, 4294967295, %v2754_v11  ;;  %v2756_v14 = vmov 0 }
  0x92   :  { %181 = vst [vmem:[#allocation3 + $0x18] sm:$0xf0] %v173_v16 }
  0x93   :  { %180 = vst [vmem:[#allocation3 + $0x50] sm:$0xf0] %v172_v17 }
  0x95   :  { %v344_v20 = vpop.permute.xlu2 %343  ;;  %v1983_v21 = vpop.permute.xlu0 %212 }
  0x96   :  { %v219_v22 = vsel %vm2699_vm7, %v1936_v1, %v1983_v21  ;;  %vm2705_vm7 = vcmp.le.s32.totalorder %v2023_v53, 14 }
  0x97   :  { %v227_v23 = vsel %vm1979_vm8, %v219_v22, 0.0 }
  0x98   :  { %231 = vst [vmem:[#allocation3 + $0x78] sm:$0xf] %v227_v23  ;;  %v2760_v23 = vmov 0 }
  0x9d   :  { %v1990_v24 = vpop.permute.xlu1 %261  ;;  %v346_v25 = vpop.permute.xlu2 %345 }
  0x9e   :  { %v270_v26 = vsel %vm2704_vm9, %v1990_v24, %v264_v9  ;;  %v352_v27 = vsel %vm2698_vm10, %v344_v20, %v346_v25 }
  0x9f   :  { %v278_v28 = vsel %vm1932_vm1, %v270_v26, 0.0  ;;  %v360_v29 = vsel %vm1971_vm6, %v352_v27, 0.0  ;;  %vm2777_vm1 = vcmp.ge.s32.totalorder %v2023_v53, 1 }
  0xa0   :  { %v286_v30 = vrot.slane %v278_v28, 4  ;;  %v368_v31 = vrot.slane %v360_v29, 4 }
  0xa2   :  { %294 = vst [vmem:[#allocation3 + $0x78] sm:$0xf0] %v286_v30 }
  0xa3   :  { %376 = vst [vmem:[#allocation3 + $0x28] sm:$0xf0] %v368_v31 }
  0xa5   :  { %v266_v35 = vpop.permute.xlu1 %265  ;;  %v340_v36 = vpop.permute.xlu2 %339 }
  0xa6   :  { %v348_v37 = vpop.permute.xlu0 %347  ;;  %v271_v38 = vsel %vm2704_vm9, %v264_v9, %v266_v35  ;;  %vm2071_vm9 = vcmp.ge.s32.totalorder %v20_v45, 1 }
  0xa7   :  { %v353_v39 = vsel %vm2698_vm10, %v346_v25, %v348_v37  ;;  %v279_v40 = vsel %vm1999_vm11, %v271_v38, 0.0 }
  0xa8   :  { %v361_v41 = vsel %vm2003_vm12, %v353_v39, 0.0  ;;  %v287_v42 = vrot.slane %v279_v40, 4 }
  0xa9   :  { %v369_v44 = vrot.slane %v361_v41, 4 }
  0xaa   :  { %295 = vst [vmem:[#allocation3 + $0x80] sm:$0xf0] %v287_v42 }
  0xab   :  { %377 = vst [vmem:[#allocation3 + $0x40] sm:$0xf0] %v369_v44 }
  0xad   :  { %v462_v47 = vpop.permute.xlu2 %461 }
  0xae   :  { %v411_v49 = vpop.permute.xlu1 %410 }
  0xb1   :  { %v342_v52 = vpop.permute.xlu0 %341 }
  0xb2   :  { %v350_v54 = vsel %vm2698_vm10, %v340_v36, %v342_v52  ;;  %v351_v55 = vsel %vm2698_vm10, %v342_v52, %v344_v20  ;;  %vm2038_vm10 = vmand %vm2702_vm15, %vm1999_vm11 }
  0xb3   :  { %v358_v58 = vsel %vm2015_vm13, %v350_v54, 0.0  ;;  %v359_v59 = vsel %vm2019_vm14, %v351_v55, 0.0  ;;  %v2751_v63 = vsel %vm2038_vm10, 4294967295, %v2750_v63  ;;  %vm2064_vm15 = vmand %vm2705_vm7, %vm2043_vm5  ;;  %v2769_v55 = vmov 0 }
  0xb4   :  { %v366_v60 = vrot.slane %v358_v58, 4  ;;  %v367_v61 = vrot.slane %v359_v59, 4  ;;  %v2757_v14 = vsel %vm2064_vm15, 4294967295, %v2756_v14  ;;  %vm2083_vm7 = vmand %vm2710_vm2, %vm2071_vm9  ;;  %vm2766_vm2 = vcmp.le.s32.totalorder %v2023_v53, 14  ;;  %v677_v59 = vld [vmem:[%s2694_s2] sm:$0xff] }
  0xb5   :  { %v405_v57 = vpop.permute.xlu2 %404  ;;  %v2761_v23 = vsel %vm2083_vm7, 4294967295, %v2760_v23 }
  0xb6   :  { %374 = vst [vmem:[#allocation3 + $0x8] sm:$0xf0] %v366_v60  ;;  %v409_v6 = vpop.permute.xlu1 %408 }
  0xb7   :  { %375 = vst [vmem:[#allocation3 + $0x88] sm:$0xf0] %v367_v61  ;;  %v416_v9 = vsel %vm2709_vm0, %v409_v6, %v411_v49 }
  0xb8   :  { %v424_v13 = vsel %vm2038_vm10, %v416_v9, 0.0  ;;  %vm2762_vm10 = vcmask 7168  }
  0xb9   :  { %428 = vst [vmem:[#allocation3 + $0x60] sm:$0xf] %v424_v13  ;;  %v407_v10 = vpop.permute.xlu0 %406 }
  0xba   :  { %v415_v15 = vsel %vm2709_vm0, %v407_v10, %v409_v6  ;;  %v414_v16 = vsel %vm2709_vm0, %v405_v57, %v407_v10 }
  0xbb   :  { %v423_v20 = vsel %vm2054_vm4, %v415_v15, 0.0  ;;  %v422_v22 = vsel %vm2064_vm15, %v414_v16, 0.0  ;;  %vm2712_vm4 = vcmask 916480   ;;  %vm2763_vm15 = vmmov %vm2762_vm10 }
  0xbc   :  { %427 = vst [vmem:[#allocation3 + $0x98] sm:$0xf] %v423_v20 }
  0xbd   :  { %426 = vst [vmem:[#allocation3 + $0x10] sm:$0xf] %v422_v22  ;;  %v454_v25 = vpop.permute.xlu2 %453 }
  0xbe   :  { %v403_v26 = vpop.permute.xlu1 %402 }
  0xbf   :  { %v413_v27 = vsel %vm2709_vm0, %v403_v26, %v405_v57  ;;  %vm2764_vm0 = vcmp.le.s32.totalorder %v1926_v62, 14  ;;  %v2731_v57 = vmov 0  }
  0xc0   :  { %v421_v28 = vsel %vm2083_vm7, %v413_v27, 0.0  ;;  %vm2107_vm7 = vmand %vm2766_vm2, %vm2019_vm14  ;;  %vm2718_vm2 = vcmask 1043456   ;;  %1777 = vset.pattern.permute.xlu1 %v2731_v57  ;;  %1779 = vset.pattern.permute.xlu0 %v2731_v57 }
  0xc1   :  { %v458_v29 = vpop.permute.xlu0 %457  ;;  %425 = vst [vmem:[#allocation3 + $0x58] sm:$0xf] %v421_v28  ;;  %v2768_v48 = vsel %vm2107_vm7, 4294967295, %v2767_v48  ;;  %1778 = vset.pattern.permute.xlu2 %v2731_v57 }
  0xc5   :  { %v260_v30 = vpop.permute.xlu2 %259 }
  0xc6   :  { %v258_v31 = vpop.permute.xlu1 %257  ;;  %v269_v32 = vsel %vm2762_vm10, %v260_v30, %v1990_v24  ;;  %vm2765_vm10 = vcmp.le.s32.totalorder %v1959_v8, 14 }
  0xc7   :  { %v268_v35 = vsel %vm2763_vm15, %v258_v31, %v260_v30  ;;  %v277_v36 = vsel %vm2043_vm5, %v269_v32, 0.0  ;;  %vm2713_vm15 = vcmask 908288  }
  0xc8   :  { %v276_v37 = vsel %vm2071_vm9, %v268_v35, 0.0  ;;  %v285_v38 = vrot.slane %v277_v36, 4  ;;  %v2783_v35 = vmov 0 }
  0xc9   :  { %v460_v39 = vpop.permute.xlu0 %459  ;;  %v284_v40 = vrot.slane %v276_v37, 4 }
  0xca   :  { %v466_v41 = vsel %vm2712_vm4, %v458_v29, %v460_v39  ;;  %v467_v42 = vsel %vm2712_vm4, %v460_v39, %v462_v47  ;;  %293 = vst [vmem:[#allocation3 + $0x68] sm:$0xf0] %v285_v38  ;;  %vm2771_vm4 = vcmp.le.s32.totalorder %v1959_v8, 14 }
  0xcb   :  { %v474_v24 = vsel %vm2764_vm0, %v466_v41, 0.0  ;;  %v475_v43 = vsel %vm2765_vm10, %v467_v42, 0.0  ;;  %292 = vst [vmem:[#allocation3 + $0x30] sm:$0xf0] %v284_v40  ;;  %vm2118_vm10 = vmand %vm2764_vm0, %vm1971_vm6  ;;  %vm2774_vm0 = vcmask 130048  }
  0xcc   :  { %v482_v44 = vrot.slane %v474_v24, 4  ;;  %v483_v45 = vrot.slane %v475_v43, 4  ;;  %v2770_v55 = vsel %vm2118_vm10, 4294967295, %v2769_v55 }
  0xcd   :  { %v519_v46 = vpop.permute.xlu2 %518 }
  0xce   :  { %490 = vst [vmem:[#allocation3 + $0x98] sm:$0xf0] %v482_v44  ;;  %v521_v47 = vpop.permute.xlu1 %520 }
  0xcf   :  { %491 = vst [vmem:[#allocation3 + $0x60] sm:$0xf0] %v483_v45  ;;  %v528_v49 = vsel %vm2713_vm15, %v519_v46, %v521_v47  ;;  %vm2127_vm15 = vmand %vm2771_vm4, %vm2003_vm12  ;;  %vm2775_vm4 = vcmask 908288  }
  0xd0   :  { %v536_v52 = vsel %vm2107_vm7, %v528_v49, 0.0  ;;  %v2773_v56 = vsel %vm2127_vm15, 4294967295, %v2772_v56  ;;  %vm679_vm7 = vcmp.gt.f32.partialorder %v677_v59, 0.5  ;;  %vm2776_vm6 = vmmov %vm2775_vm4  ;;  %v555_v49 = vld [vmem:[#allocation3 + $0x28] sm:$0xff] }
  0xd1   :  { %v525_v54 = vpop.permute.xlu0 %524  ;;  %540 = vst [vmem:[#allocation3 + $0x48] sm:$0xf] %v536_v52  ;;  %v681_v10 = vsel %vm679_vm7, 1, %v2731_v57  ;;  %vm2780_vm7 = vcmp.le.s32.totalorder %v2047_v7, 14  ;;  %v556_v52 = vld [vmem:[#allocation3 + $0x40] sm:$0xff] }
  0xd2   :  { %684 = vperm.xlu1 %1777, %v681_v10  }
  0xd5   :  { %v2131_v58 = vpop.permute.xlu2 %145  ;;  %v559_v45 = vld [vmem:[#allocation3 + $0x98] sm:$0xff] }
  0xd6   :  { %v523_v60 = vpop.permute.xlu1 %522  ;;  %v155_v61 = vsel %vm2774_vm0, %v2131_v58, %v1962_v12  ;;  %vm2781_vm0 = vcmp.le.s32.totalorder %v2023_v53, 14 }
  0xd7   :  { %v529_v6 = vsel %vm2775_vm4, %v521_v47, %v523_v60  ;;  %v530_v9 = vsel %vm2776_vm6, %v523_v60, %v525_v54  ;;  %v163_v13 = vsel %vm2777_vm1, %v155_v61, 0.0  ;;  %vm2778_vm6 = vcmask 916480   ;;  %vm2782_vm4 = vmmov %vm2780_vm7  ;;  %v560_v47 = vld [vmem:[#allocation3 + $0x60] sm:$0xff]  ;;  %v1739_v54 = vld [vmem:[%s2694_s2 + $0x30] sm:$0xff] }
  0xd8   :  { %v537_v12 = vsel %vm2118_vm10, %v529_v6, 0.0  ;;  %v538_v15 = vsel %vm2127_vm15, %v530_v9, 0.0  ;;  %v171_v16 = vrot.slane %v163_v13, 4  ;;  %v562_v20 = vld [vmem:[#allocation3 + $0x48] sm:$0xf]  ;;  %vm2779_vm1 = vmmov %vm2778_vm6  ;;  %v551_v60 = vld [vmem:[#allocation3 + $0x78] sm:$0xff] }
  0xd9   :  { %541 = vst [vmem:[#allocation3 + $0x70] sm:$0xf] %v537_v12  ;;  %v456_v22 = vpop.permute.xlu0 %455  ;;  %1726 = vmatpush.msk.msra.mxu1 %vm2718_vm2, %v562_v20  ;;  %vm2162_vm10 = vmand %vm2782_vm4, %vm2015_vm13  ;;  %v1740_v61 = vld [vmem:[%s2694_s2 + $0x38] sm:$0xf]  ;;  %v554_v6 = vld [vmem:[#allocation3 + $0x88] sm:$0xff] }
  0xda   :  { %542 = vst [vmem:[#allocation3 + $0x90] sm:$0xf] %v538_v15  ;;  %v464_v26 = vsel %vm2778_vm6, %v454_v25, %v456_v22  ;;  %v465_v27 = vsel %vm2779_vm1, %v456_v22, %v458_v29  ;;  %v2784_v35 = vsel %vm2162_vm10, 4294967295, %v2783_v35  ;;  %v678_v25 = vld [vmem:[%s2694_s2 + $0x8] sm:$0xf]  ;;  %v1737_v29 = vld [vmem:[%s2694_s2 + $0x20] sm:$0xff] }
  0xdb   :  { %v472_v28 = vsel %vm2780_vm7, %v464_v26, 0.0  ;;  %v473_v30 = vsel %vm2781_vm0, %v465_v27, 0.0  ;;  %179 = vst [vmem:[#allocation3 + $0x38] sm:$0xf0] %v171_v16  ;;  %vm680_vm6 = vcmp.gt.f32.partialorder %v678_v25, 0.5  ;;  %vm749_vm1 = vcmp.gt.f32.partialorder %v1737_v29, 0.5 }
  0xdc   :  { %v480_v31 = vrot.slane %v472_v28, 4  ;;  %v481_v32 = vrot.slane %v473_v30, 4  ;;  %vm2785_vm7 = vcmask 908288   ;;  %v682_v38 = vsel %vm680_vm6, 1, %v2731_v57  ;;  %v547_v26 = vld [vmem:[#allocation3 + $0x50] sm:$0xff] }
  0xdd   :  { %v751_v39 = vsel %vm749_vm1, 1, %v2731_v57  ;;  %vm2786_vm0 = vcmp.ge.s32.totalorder %v1959_v8, 1  ;;  %687 = vperm.xlu1 %1777, %v682_v38   ;;  %vm2789_vm6 = vcmask 121856   ;;  %v1735_v29 = vld [vmem:[%s2694_s2 + $0x10] sm:$0xff] }
  0xde   :  { %488 = vst [vmem:[#allocation3 + $0x58] sm:$0xf0] %v480_v31  ;;  %v517_v36 = vpop.permute.xlu1 %516  ;;  %vm2179_vm4 = vmand %vm2786_vm0, %vm2003_vm12  ;;  %754 = vperm.xlu0 %1779, %v751_v39   ;;  %vm2790_vm0 = vcmask 130048   ;;  %v544_v39 = vld [vmem:[%s2693_s1 + $0x8] sm:$0xf] }
  0xdf   :  { %489 = vst [vmem:[#allocation3 + $0x10] sm:$0xf0] %v481_v32  ;;  %v527_v37 = vsel %vm2785_vm7, %v517_v36, %v519_v46  ;;  %vm788_vm7 = vcmp.gt.f32.partialorder %v1739_v54, 0.5  ;;  %v553_v32 = vld [vmem:[#allocation3 + $0x8] sm:$0xff] }
  0xe0   :  { %v535_v41 = vsel %vm2162_vm10, %v527_v37, 0.0  ;;  %v563_v42 = vld [vmem:[#allocation3 + $0x70] sm:$0xf]  ;;  %v790_v13 = vsel %vm788_vm7, 1, %v2731_v57  ;;  %vm2794_vm10 = vcmp.ge.s32.totalorder %v2047_v7, 1  ;;  %vm2796_vm7 = vcmask 138240  }
  0xe1   :  { %v215_v24 = vpop.permute.xlu0 %214  ;;  %539 = vst [vmem:[#allocation3 + $0x20] sm:$0xf] %v535_v41  ;;  %1729 = vmatpush.msk.msra.mxu2 %vm2718_vm2, %v563_v42  ;;  %v564_v43 = vld [vmem:[#allocation3 + $0x90] sm:$0xf]  ;;  %v2802_v37 = vmov 0 }
  0xe2   :  { %v220_v44 = vsel %vm2789_vm6, %v1983_v21, %v215_v24  ;;  %1732 = vmatpush.msk.msra.mxu3 %vm2718_vm2, %v564_v43  ;;  %vm789_vm6 = vcmp.gt.f32.partialorder %v1740_v61, 0.5  ;;  %vm2791_vm2 = vcmp.ge.s32.totalorder %v1959_v8, 1  ;;  %v1738_v54 = vld [vmem:[%s2694_s2 + $0x28] sm:$0xf] }
  0xe3   :  { %v228_v46 = vsel %vm2179_vm4, %v220_v44, 0.0  ;;  %643 = vmatpush.msra.mxu2 %v559_v45  ;;  %vm2205_vm1 = vmand %vm2791_vm2, %vm1999_vm11  ;;  %v791_v16 = vsel %vm789_vm6, 1, %v2731_v57  ;;  %vm2795_vm2 = vcmask 1043456  }
  0xe4   :  { %232 = vst [vmem:[#allocation3 + $0x80] sm:$0xf] %v228_v46  ;;  %666 = vmatpush.msra.mxu3 %v560_v47  ;;  %v2808_v46 = vmov 0  ;;  %v93_v47 = vpop.permute.xlu2 %92 }
  0xe5   :  { %644 = vmatpush.msra.mxu2 %v555_v49  ;;  %793 = vperm.xlu1 %1777, %v790_v13   ;;  %v557_v28 = vld [vmem:[#allocation3 + $0x58] sm:$0xff]  ;;  %v2811_v49 = vmov 0 }
  0xe6   :  { %v558_v21 = vld [vmem:[#allocation3 + $0x10] sm:$0xff]  ;;  %667 = vmatpush.msra.mxu3 %v556_v52  ;;  %v144_v59 = vpop.permute.xlu1 %143  ;;  %796 = vperm.xlu0 %1779, %v791_v16  }
  0xe7   :  { %620 = vmatpush.msra.mxu1 %v558_v21  ;;  %v154_v9 = vsel %vm2790_vm0, %v144_v59, %v2131_v58  ;;  %645 = vmatpush.msra.mxu2 %v551_v60  ;;  %v2214_v58 = vld [vmem:[%s2693_s1] sm:$0xff]  ;;  %vm2720_vm0 = vcmask 293888  }
  0xe8   :  { %v162_v12 = vsel %vm2794_vm10, %v154_v9, 0.0  ;;  %v561_v15 = vld [vmem:[#allocation3 + $0x20] sm:$0xf]  ;;  %vm2797_vm10 = vcmp.ge.s32.totalorder %v2023_v53, 1 }
  0xe9   :  { %621 = vmatpush.msra.mxu1 %v554_v6  ;;  %v101_v20 = vpop.permute.xlu0 %100  ;;  %v170_v22 = vrot.slane %v162_v12, 4  ;;  %1723 = vmatpush.msk.msra.mxu0 %vm2795_vm2, %v561_v15  ;;  %vm2228_vm6 = vmand %vm2797_vm10, %vm2019_vm14  ;;  %vm2800_vm2 = vcmask 121856   ;;  %vm2805_vm10 = vcmask 293888  }
  0xea   :  { %v106_v27 = vsel %vm2796_vm7, %v1948_v4, %v101_v20  ;;  %646 = vmatpush.msra.mxu2 %v547_v26  ;;  %v2798_v4 = vmov 0  ;;  %vm710_vm7 = vcmp.gt.f32.partialorder %v1735_v29, 0.5 }
  0xeb   :  { %v114_v30 = vsel %vm2205_vm1, %v106_v27, 0.0  ;;  %178 = vst [vmem:[#allocation3] sm:$0xf0] %v170_v22  ;;  %v552_v31 = vld [vmem:[#allocation3 + $0x80] sm:$0xff]  ;;  %1730 = vmatmul.msk.f32.vlgmr.msra.gmra.mxu2 %vm2720_vm0, %v2214_v58  ;;  %597 = vmatpush.msra.mxu0 %v557_v28  ;;  %v2799_v4 = vsel %vm2228_vm6, 4294967295, %v2798_v4  ;;  %vm2801_vm0 = vcmp.ge.s32.totalorder %v2047_v7, 1 }
  0xec   :  { %118 = vst [vmem:[#allocation3 + $0x18] sm:$0xf] %v114_v30  ;;  %668 = vmatpush.msra.mxu3 %v552_v31  ;;  %vm2241_vm15 = vmand %vm2801_vm0, %vm2015_vm13  ;;  %v712_v41 = vsel %vm710_vm7, 1, %v2731_v57 }
  0xed   :  { %598 = vmatpush.msra.mxu0 %v553_v32  ;;  %v2803_v37 = vsel %vm2241_vm15, 4294967295, %v2802_v37  ;;  %715 = vperm.xlu2 %1778, %v712_v41   ;;  %vm2804_vm0 = vmmov %vm2800_vm2 }
  0xee   :  { %v209_v25 = vpop.permute.xlu1 %208  ;;  %vm2806_vm7 = vmmov %vm2805_vm10 }
  0xef   :  { %v218_v36 = vsel %vm2800_vm2, %v209_v25, %v1936_v1  ;;  %v1736_v1 = vld [vmem:[%s2694_s2 + $0x18] sm:$0xf] }
  0xf0   :  { %v226_v38 = vsel %vm2228_vm6, %v218_v36, 0.0  ;;  %vm711_vm2 = vcmp.gt.f32.partialorder %v1736_v1, 0.5  ;;  %vm2807_vm6 = vcmp.ge.s32.totalorder %v2023_v53, 1 }
  0xf1   :  { %v207_v42 = vpop.permute.xlu0 %206  ;;  %230 = vst [vmem:[#allocation3 + $0x68] sm:$0xf] %v226_v38  ;;  %v713_v45 = vsel %vm711_vm2, 1, %v2731_v57  ;;  %vm2265_vm14 = vmand %vm2807_vm6, %vm2043_vm5  ;;  %vm2813_vm6 = vcmask 138240  }
  0xf2   :  { %v217_v24 = vsel %vm2804_vm0, %v207_v42, %v209_v25  ;;  %v2809_v46 = vsel %vm2265_vm14, 4294967295, %v2808_v46  ;;  %vm2810_vm0 = vcmp.ge.s32.totalorder %v2047_v7, 1  ;;  %vm2814_vm2 = vmmov %vm2813_vm6 }
  0xf3   :  { %v225_v43 = vsel %vm2241_vm15, %v217_v24, 0.0  ;;  %v548_v44 = vld [vmem:[#allocation3 + $0x18] sm:$0xff]  ;;  %1731 = vmatmul.msk.f32.gmra.mxu2 %vm2805_vm10, %v544_v39  ;;  %vm2273_vm10 = vmand %vm2810_vm0, %vm2071_vm9  ;;  %vm2815_vm0 = vcmask 293888  }
  0xf4   :  { %229 = vst [vmem:[#allocation3 + $0x30] sm:$0xf] %v225_v43  ;;  %669 = vmatpush.msra.mxu3 %v548_v44  ;;  %v2812_v49 = vsel %vm2273_vm10, 4294967295, %v2811_v49  ;;  %vm2818_vm15 = vmmov %vm2815_vm0 }
  0xf5   :  { %1733 = vmatmul.msk.f32.vlgmr.msra.gmra.mxu3 %vm2806_vm7, %v2214_v58  ;;  %718 = vperm.xlu2 %1778, %v713_v45   ;;  %vm750_vm7 = vcmp.gt.f32.partialorder %v1738_v54, 0.5 }
  0xf6   :  { %v752_v13 = vsel %vm750_vm7, 1, %v2731_v57 }
  0xf8   :  { %v550_v52 = vld [vmem:[#allocation3 + $0x68] sm:$0xff] }
  0xf9   :  { %v95_v21 = vpop.permute.xlu0 %94  ;;  %622 = vmatpush.msra.mxu1 %v550_v52 }
  0xfa   :  { %v104_v59 = vsel %vm2813_vm6, %v95_v21, %v1950_v5  ;;  %v103_v60 = vsel %vm2814_vm2, %v93_v47, %v95_v21  ;;  %vm2816_vm6 = vmmov %vm2815_vm0 }
  0xfb   :  { %v112_v61 = vsel %vm2265_vm14, %v104_v59, 0.0  ;;  %v111_v6 = vsel %vm2273_vm10, %v103_v60, 0.0  ;;  %v549_v9 = vld [vmem:[#allocation3 + $0x30] sm:$0xff]  ;;  %vm2817_vm2 = vmmov %vm2815_vm0 }
  0xfc   :  { %116 = vst [vmem:[#allocation3 + $0x38] sm:$0xf] %v112_v61  ;;  %599 = vmatpush.msra.mxu0 %v549_v9  ;;  %vm2819_vm14 = vmmov %vm2815_vm0 }
  0xfd   :  { %115 = vst [vmem:[#allocation3] sm:$0xf] %v111_v6  ;;  %1734 = vmatmul.msk.f32.gmra.mxu3 %vm2815_vm0, %v544_v39  ;;  %757 = vperm.xlu2 %1778, %v752_v13  }
 0x103   :  { %v546_v12 = vld [vmem:[#allocation3 + $0x38] sm:$0xff] }
 0x104   :  { %v545_v5 = vld [vmem:[#allocation3] sm:$0xff]  ;;  %623 = vmatpush.msra.mxu1 %v546_v12 }
 0x105   :  { %600 = vmatpush.msra.mxu0 %v545_v5  ;;  %1727 = vmatmul.msk.f32.vlgmr.msra.gmra.mxu1 %vm2816_vm6, %v2214_v58 }
 0x106   :  { %1724 = vmatmul.msk.f32.vlgmr.msra.gmra.mxu0 %vm2817_vm2, %v2214_v58 }
 0x10d   :  { %1728 = vmatmul.msk.f32.gmra.mxu1 %vm2818_vm15, %v544_v39 }
 0x10e   :  { %1725 = vmatmul.msk.f32.gmra.mxu0 %vm2819_vm14, %v544_v39 }
 0x144   :  { %v685_v15 = vpop.permute.xlu1 %684 }
 0x145   :  { %vm689_vm7 = vcmp.eq.s32.totalorder %v685_v15, 1 }
 0x147   :  { %v716_v16 = vpop.permute.xlu2 %715 }
 0x148   :  { %vm2727_vm0 = vcmp.eq.s32.totalorder %v716_v16, 1 }
 0x14f   :  { %v2295_v20 = vpop.permute.xlu1 %687  ;;  %v2299_v31 = vpop.permute.xlu2 %718 }
 0x150   :  { %v755_v58 = vpop.permute.xlu0 %754  ;;  %vm690_vm15 = vcmp.eq.s32.totalorder %v2295_v20, 1  ;;  %vm2730_vm2 = vcmp.eq.s32.totalorder %v2299_v31, 1 }
 0x151   :  { %vm2728_vm6 = vcmp.eq.s32.totalorder %v755_v58, 1 }
 0x157   :  { %v794_v32 = vpop.permute.xlu1 %793  ;;  %v2307_v47 = vpop.permute.xlu2 %757 }
 0x158   :  { %vm2726_vm14 = vcmp.eq.s32.totalorder %v794_v32, 1  ;;  %v2309_v21 = vpop.permute.xlu0 %796 }
 0x16e   :  { %v648_v22 = vpop.f32.mrf.mxu2 }
 0x16f   :  { %v701_v26 = vmul.f32 %v648_v22, %v648_v22  ;;  %v693_v27 = vsel %vm689_vm7, %v648_v22, 1.0 }
 0x171   :  { %v724_v28 = vsel %vm2727_vm0, %v701_v26, 1.0  ;;  %v740_v30 = vmul.f32 %v701_v26, %v701_v26 }
 0x172   :  { %v732_v25 = vmul.f32 %v724_v28, %v693_v27 }
 0x173   :  { %v779_v29 = vmul.f32 %v740_v30, %v740_v30  ;;  %v763_v36 = vsel %vm2728_vm6, %v740_v30, 1.0 }
 0x174   :  { %v771_v1 = vmul.f32 %v763_v36, %v732_v25 }
 0x175   :  { %v802_v24 = vsel %vm2726_vm14, %v779_v29, 1.0  ;;  %vm2729_vm14 = vcmp.eq.s32.totalorder %v2307_v47, 1 }
 0x176   :  { %v651_v38 = vpop.f32.mrf.mxu2  ;;  %v810_v52 = vmul.f32 %v802_v24, %v771_v1 }
 0x177   :  { %v705_v42 = vmul.f32 %v651_v38, %v651_v38  ;;  %v697_v59 = vsel %vm690_vm15, %v651_v38, 1.0 }
 0x178   :  { %v671_v39 = vpop.f32.mrf.mxu3  ;;  %v822_v12 = vrot.slane %v810_v52, 4 }
 0x179   :  { %v702_v41 = vmul.f32 %v671_v39, %v671_v39  ;;  %v694_v43 = vsel %vm689_vm7, %v671_v39, 1.0  ;;  %v744_v54 = vmul.f32 %v705_v42, %v705_v42  ;;  %v728_v60 = vsel %vm2730_vm2, %v705_v42, 1.0 }
 0x17a   :  { %v736_v22 = vmul.f32 %v728_v60, %v697_v59 }
 0x17b   :  { %v725_v44 = vsel %vm2727_vm0, %v702_v41, 1.0  ;;  %v741_v45 = vmul.f32 %v702_v41, %v702_v41  ;;  %v783_v26 = vmul.f32 %v744_v54, %v744_v54  ;;  %v767_v27 = vsel %vm2729_vm14, %v744_v54, 1.0 }
 0x17c   :  { %v733_v61 = vmul.f32 %v725_v44, %v694_v43  ;;  %vm2822_vm14 = vcmp.eq.s32.totalorder %v755_v58, 1 }
 0x17d   :  { %v764_v9 = vsel %vm2728_vm6, %v741_v45, 1.0  ;;  %v780_v29 = vmul.f32 %v741_v45, %v741_v45  ;;  %vm2820_vm6 = vcmp.eq.s32.totalorder %v716_v16, 1 }
 0x17e   :  { %v772_v25 = vmul.f32 %v764_v9, %v733_v61  ;;  %vm2821_vm0 = vmmov %vm2820_vm6 }
 0x180   :  { %v674_v6 = vpop.f32.mrf.mxu3 }
 0x181   :  { %v706_v13 = vmul.f32 %v674_v6, %v674_v6  ;;  %v698_v59 = vsel %vm690_vm15, %v674_v6, 1.0 }
 0x182   :  { %v625_v5 = vpop.f32.mrf.mxu1 }
 0x183   :  { %v602_v28 = vpop.f32.mrf.mxu0  ;;  %v700_v30 = vmul.f32 %v625_v5, %v625_v5  ;;  %v729_v36 = vsel %vm2730_vm2, %v706_v13, 1.0  ;;  %v745_v39 = vmul.f32 %v706_v13, %v706_v13  ;;  %v692_v41 = vsel %vm689_vm7, %v625_v5, 1.0  ;;  %vm2823_vm2 = vmmov %vm2822_vm14 }
 0x184   :  { %v699_v38 = vmul.f32 %v602_v28, %v602_v28  ;;  %v691_v24 = vsel %vm689_vm7, %v602_v28, 1.0  ;;  %v737_v9 = vmul.f32 %v729_v36, %v698_v59  ;;  %vm2825_vm7 = vcmp.eq.s32.totalorder %v2307_v47, 1 }
 0x185   :  { %v723_v1 = vsel %vm2820_vm6, %v700_v30, 1.0  ;;  %v739_v42 = vmul.f32 %v700_v30, %v700_v30  ;;  %vm2824_vm6 = vcmp.eq.s32.totalorder %v794_v32, 1  ;;  %v768_v15 = vsel %vm2825_vm7, %v745_v39, 1.0 }
 0x186   :  { %v722_v43 = vsel %vm2821_vm0, %v699_v38, 1.0  ;;  %v738_v44 = vmul.f32 %v699_v38, %v699_v38  ;;  %v731_v54 = vmul.f32 %v723_v1, %v692_v41  ;;  %v803_v30 = vsel %vm2824_vm6, %v780_v29, 1.0  ;;  %vm2826_vm0 = vmmov %vm2824_vm6 }
 0x187   :  { %v730_v45 = vmul.f32 %v722_v43, %v691_v24  ;;  %v762_v60 = vsel %vm2822_vm14, %v739_v42, 1.0  ;;  %v778_v61 = vmul.f32 %v739_v42, %v739_v42  ;;  %v830_v38 = vmul.f32 %v822_v12, %v810_v52  ;;  %vm2827_vm10 = vmmov %vm2826_vm0 }
 0x188   :  { %v761_v13 = vsel %vm2823_vm2, %v738_v44, 1.0  ;;  %v777_v5 = vmul.f32 %v738_v44, %v738_v44  ;;  %v770_v57 = vmul.f32 %v762_v60, %v731_v54  ;;  %v775_v24 = vmul.f32 %v767_v27, %v736_v22  ;;  %vm2831_vm6 = vmmov %vm2825_vm7 }
 0x189   :  { %v769_v16 = vmul.f32 %v761_v13, %v730_v45  ;;  %v801_v28 = vsel %vm2826_vm0, %v778_v61, 1.0  ;;  %vm2828_vm14 = vcmp.eq.s32.totalorder %v2309_v21, 1  ;;  %v811_v44 = vmul.f32 %v803_v30, %v772_v25  ;;  %vm2832_vm7 = vmmov %vm2831_vm6 }
 0x18a   :  { %v800_v6 = vsel %vm2827_vm10, %v777_v5, 1.0  ;;  %v809_v41 = vmul.f32 %v801_v28, %v770_v57  ;;  %v628_v1 = vpop.f32.mrf.mxu1  ;;  %v806_v58 = vsel %vm2828_vm14, %v783_v26, 1.0  ;;  %v776_v29 = vmul.f32 %v768_v15, %v737_v9  ;;  %vm2833_vm0 = vmmov %vm2828_vm14 }
 0x18b   :  { %v808_v36 = vmul.f32 %v800_v6, %v769_v16  ;;  %v605_v42 = vpop.f32.mrf.mxu0  ;;  %v704_v43 = vmul.f32 %v628_v1, %v628_v1  ;;  %v784_v54 = vmul.f32 %v745_v39, %v745_v39  ;;  %v696_v45 = vsel %vm690_vm15, %v628_v1, 1.0  ;;  %vm2835_vm14 = vmmov %vm2833_vm0 }
 0x18c   :  { %v703_v59 = vmul.f32 %v605_v42, %v605_v42  ;;  %v821_v60 = vrot.slane %v809_v41, 4  ;;  %vm2829_vm2 = vcmp.eq.s32.totalorder %v2299_v31, 1  ;;  %v695_v52 = vsel %vm690_vm15, %v605_v42, 1.0  ;;  %vm2834_vm15 = vmmov %vm2833_vm0 }
 0x18d   :  { %v727_v32 = vsel %vm2829_vm2, %v704_v43, 1.0  ;;  %v743_v57 = vmul.f32 %v704_v43, %v704_v43  ;;  %vm2830_vm10 = vmmov %vm2829_vm2  ;;  %v820_v27 = vrot.slane %v808_v36, 4  ;;  %v807_v20 = vsel %vm2833_vm0, %v784_v54, 1.0 }
 0x18e   :  { %v726_v12 = vsel %vm2830_vm10, %v703_v59, 1.0  ;;  %v742_v22 = vmul.f32 %v703_v59, %v703_v59  ;;  %v735_v26 = vmul.f32 %v727_v32, %v696_v45  ;;  %v823_v30 = vrot.slane %v811_v44, 4 }
 0x18f   :  { %v734_v25 = vmul.f32 %v726_v12, %v695_v52  ;;  %v766_v39 = vsel %vm2831_vm6, %v743_v57, 1.0  ;;  %v782_v61 = vmul.f32 %v743_v57, %v743_v57  ;;  %v814_v15 = vmul.f32 %v806_v58, %v775_v24 }
 0x190   :  { %v765_v9 = vsel %vm2832_vm7, %v742_v22, 1.0  ;;  %v781_v13 = vmul.f32 %v742_v22, %v742_v22  ;;  %v774_v5 = vmul.f32 %v766_v39, %v735_v26  ;;  %v829_v28 = vmul.f32 %v821_v60, %v809_v41 }
 0x191   :  { %v773_v31 = vmul.f32 %v765_v9, %v734_v25  ;;  %v805_v16 = vsel %vm2834_vm15, %v782_v61, 1.0  ;;  %v828_v42 = vmul.f32 %v820_v27, %v808_v36  ;;  %v815_v47 = vmul.f32 %v807_v20, %v776_v29 }
 0x192   :  { %v804_v6 = vsel %vm2835_vm14, %v781_v13, 1.0  ;;  %v813_v1 = vmul.f32 %v805_v16, %v774_v5  ;;  %v831_v45 = vmul.f32 %v823_v30, %v811_v44  ;;  %v834_v57 = vmul.f32 %v830_v38, %v814_v15 }
 0x193   :  { %v812_v43 = vmul.f32 %v804_v6, %v773_v31  ;;  %vm2836_vm2 = vcmask 1043456  }
 0x194   :  { %v833_v59 = vmul.f32 %v829_v28, %v813_v1  ;;  %v835_v52 = vmul.f32 %v831_v45, %v815_v47  ;;  %vm2837_vm10 = vmmov %vm2836_vm2  ;;  %v1741_v45 = vld [vmem:[%s2694_s2 + $0x40] sm:$0xff] }
 0x195   :  { %v832_v32 = vmul.f32 %v828_v42, %v812_v43  ;;  %vm2838_vm6 = vmmov %vm2836_vm2 }
 0x196   :  { %v841_v54 = vsel %vm2836_vm2, %v833_v59, 0.0  ;;  %v843_v12 = vsel %vm2838_vm6, %v834_v57, 0.0  ;;  %vm2839_vm7 = vmmov %vm2836_vm2 }
 0x197   :  { %v840_v24 = vsel %vm2837_vm10, %v832_v32, 0.0  ;;  %v845_v21 = vsel %vm2839_vm7, %v835_v52, 0.0  ;;  %vm2840_vm0 = vmmov %vm2836_vm2 }
 0x198   :  { %v842_v58 = vadd.f32 %v841_v54, %v840_v24  ;;  %vm2841_vm15 = vmmov %vm2840_vm0 }
 0x199   :  { %vm2842_vm14 = vmmov %vm2840_vm0 }
 0x19a   :  { %v844_v41 = vadd.f32 %v843_v12, %v842_v58  ;;  %vm2843_vm2 = vmmov %vm2840_vm0 }
 0x19c   :  { %v846_v60 = vadd.f32 %v845_v21, %v844_v41 }
 0x19e   :  { %847 = vadd.xlane.f32.xlu1 %v846_v60 }
 0x211   :  { %v848_v36 = vpop.xlane.xlu1 %847 }
 0x212   :  { %v849_v22 = vmul.f32 0.001953125, %v848_v36 }
 0x214   :  { %v850_v29 = vsub.f32 %v832_v32, %v849_v22  ;;  %v851_v26 = vsub.f32 %v833_v59, %v849_v22  ;;  %v852_v44 = vsub.f32 %v834_v57, %v849_v22  ;;  %v853_v27 = vsub.f32 %v835_v52, %v849_v22  ;;  %v1742_v52 = vld [vmem:[%s2694_s2 + $0x50] sm:$0xff] }
 0x216   :  { %v854_v38 = vmul.f32 %v850_v29, %v850_v29  ;;  %v855_v25 = vmul.f32 %v851_v26, %v851_v26  ;;  %v856_v39 = vmul.f32 %v852_v44, %v852_v44  ;;  %v857_v61 = vmul.f32 %v853_v27, %v853_v27 }
 0x218   :  { %v858_v9 = vsel %vm2840_vm0, %v854_v38, 0.0  ;;  %v859_v13 = vsel %vm2841_vm15, %v855_v25, 0.0  ;;  %v861_v20 = vsel %vm2842_vm14, %v856_v39, 0.0  ;;  %v863_v15 = vsel %vm2843_vm2, %v857_v61, 0.0  ;;  %vm2844_vm15 = vmmov %vm2840_vm0 }
 0x219   :  { %v860_v5 = vadd.f32 %v859_v13, %v858_v9 }
 0x21b   :  { %v862_v30 = vadd.f32 %v861_v20, %v860_v5 }
 0x21d   :  { %v864_v31 = vadd.f32 %v863_v15, %v862_v30 }
 0x21f   :  { %865 = vadd.xlane.f32.xlu2 %v864_v31 }
 0x292   :  { %v866_v16 = vpop.xlane.xlu2 %865 }
 0x293   :  { %v867_v28 = vmul.f32 0.001953125, %v866_v16 }
 0x295   :  { %v868_v6 = vadd.f32 1e-05, %v867_v28 }
 0x297   :  { %1780 = vrsqrt.f32 %v868_v6  ;;  %vm875_vm6 = vweird.f32 %v868_v6 }
 0x29d   :  { %v1781_v1 = vpop.eup %1780 }
 0x29e   :  { %v870_v42 = vmul.f32 %v1781_v1, %v868_v6  ;;  %vm876_vm10 = vweird.f32 %v1781_v1 }
 0x29f   :  { %vm877_vm7 = vmor %vm875_vm6, %vm876_vm10 }
 0x2a0   :  { %v871_v43 = vmul.f32 %v1781_v1, %v870_v42 }
 0x2a2   :  { %v872_v47 = vmul.f32 0.5, %v871_v43 }
 0x2a4   :  { %v873_v59 = vsub.f32 1.5, %v872_v47 }
 0x2a6   :  { %v874_v32 = vmul.f32 %v1781_v1, %v873_v59 }
 0x2a8   :  { %v878_v57 = vsel %vm877_vm7, %v1781_v1, %v874_v32  ;;  %vm2846_vm7 = vcmask 138240  }
 0x2a9   :  { %v879_v54 = vmul.f32 %v1741_v45, %v878_v57 }
 0x2ab   :  { %882 = vperm.xlu0 %1779, %v879_v54  }
 0x2b3   :  { %891 = vperm.xlu0 %1779, %v1742_v52  }
 0x31d   :  { %v883_v24 = vpop.permute.xlu0 %882 }
 0x31e   :  { %v885_v58 = vmul.f32 %v883_v24, %v850_v29  ;;  %v886_v12 = vmul.f32 %v883_v24, %v851_v26  ;;  %v887_v41 = vmul.f32 %v883_v24, %v852_v44  ;;  %v888_v21 = vmul.f32 %v883_v24, %v853_v27 }
 0x325   :  { %v892_v60 = vpop.permute.xlu0 %891 }
 0x326   :  { %v894_v36 = vadd.f32 %v892_v60, %v885_v58  ;;  %v895_v22 = vadd.f32 %v892_v60, %v886_v12  ;;  %v896_v38 = vadd.f32 %v892_v60, %v887_v41  ;;  %v897_v25 = vadd.f32 %v892_v60, %v888_v21  ;;  %v1127_v60 = vld [vmem:[#allocation2 + $0x14] sm:$0xf] }
 0x328   :  { %v899_v39 = vmax.f32 %v895_v22, 0.0  ;;  %v901_v61 = vmax.f32 %v897_v25, 0.0  ;;  %v898_v9 = vmax.f32 %v894_v36, 0.0  ;;  %v900_v13 = vmax.f32 %v896_v38, 0.0 }
 0x32a   :  { %v906_v5 = vrot.slane %v899_v39, 4  ;;  %v907_v20 = vrot.slane %v901_v61, 4 }
 0x32c   :  { %v2370_v30 = vsel %vm2840_vm0, %v898_v9, %v906_v5  ;;  %v2373_v15 = vsel %vm2844_vm15, %v900_v13, %v907_v20  ;;  %v1181_v9 = vld [vmem:[#allocation2 + $0x14] sm:$0xf] }
 0x32d   :  { %912 = vst [vmem:[#allocation2 + $0x4] sm:$0xff] %v2370_v30 }
 0x32e   :  { %913 = vst [vmem:[#allocation2 + $0xc] sm:$0xff] %v2373_v15 }
 0x334   :  { %v914_v29 = vld [vmem:[#allocation2] sm:$0xff] }
 0x335   :  { %v915_v26 = vld [vmem:[#allocation2 + $0x8] sm:$0xff]  ;;  %920 = vst [vmem:[#allocation1] ss:$2 sm:$0xff] %v914_v29  ;;  %v916_v44 = vld [vmem:[#allocation2 + $0x10] sm:$0xf] }
 0x336   :  { %922 = vst [vmem:[#allocation1 + $0x10] ss:$2 sm:$0xff] %v915_v26  ;;  %v958_v27 = vld [vmem:[#allocation2 + $0x10] sm:$0xf] }
 0x337   :  { %924 = vst [vmem:[#allocation1 + $0x20] ss:$2 sm:$0xff] %v916_v44  ;;  %v1012_v32 = vld [vmem:[#allocation2 + $0x10] sm:$0xf] }
 0x338   :  { %v1054_v52 = vld [vmem:[#allocation2 + $0x10] sm:$0xf] }
 0x33c   :  { %v2377_v31 = vld.sshfl [vmem:[#allocation1] sm:$0xff pattern:$0x75316420]  ;;  %v2379_v16 = vld.sshfl [vmem:[#allocation1 + $0x8] sm:$0xff pattern:$0x75316420] }
 0x33d   :  { %v928_v28 = vld.sshfl [vmem:[#allocation1 + $0x18] sm:$0xff pattern:$0x75316420]  ;;  %v927_v6 = vld.sshfl [vmem:[#allocation1 + $0x10] sm:$0xff pattern:$0x75316420] }
 0x33e   :  { %936 = vrot.lane.b32.xlu0 %v928_v28, %s1810_s16  ;;  %934 = vrot.lane.b32.xlu1 %v927_v6, %s1810_s16  ;;  %964 = vst [vmem:[#allocation1 + $0x10] ss:$2 sm:$0xff] %v915_v26  ;;  %v929_v1 = vld.sshfl [vmem:[#allocation1 + $0x20] sm:$0xff pattern:$0x75316420] }
 0x33f   :  { %966 = vst [vmem:[#allocation1 + $0x20] ss:$2 sm:$0xff] %v958_v27 }
 0x340   :  { %962 = vst [vmem:[#allocation1] ss:$2 sm:$0xff] %v914_v29 }
 0x345   :  { %v970_v42 = vld.sshfl [vmem:[#allocation1 + $0x18] sm:$0xff pattern:$0x75316420]  ;;  %v969_v43 = vld.sshfl [vmem:[#allocation1 + $0x10] sm:$0xff pattern:$0x75316420] }
 0x346   :  { %v971_v47 = vld.sshfl [vmem:[#allocation1 + $0x20] sm:$0xff pattern:$0x75316420]  ;;  %938 = vrot.lane.b32.xlu1 %v929_v1, %s1810_s16  ;;  %978 = vrot.lane.b32.xlu0 %v970_v42, %s1811_s17  ;;  %1018 = vst [vmem:[#allocation1 + $0x10] ss:$2 sm:$0xff] %v915_v26 }
 0x347   :  { %980 = vrot.lane.b32.xlu2 %v971_v47, %s1811_s17  ;;  %v968_v59 = vld.sshfl [vmem:[#allocation1 + $0x8] sm:$0xff pattern:$0x75316420]  ;;  %v967_v45 = vld.sshfl [vmem:[#allocation1] sm:$0xff pattern:$0x75316420] }
 0x348   :  { %1016 = vst [vmem:[#allocation1] ss:$2 sm:$0xff] %v914_v29  ;;  %v1277_v42 = vld [vmem:[#allocation2 + $0x14] sm:$0xf] }
 0x349   :  { %1020 = vst [vmem:[#allocation1 + $0x20] ss:$2 sm:$0xff] %v1012_v32 }
 0x34d   :  { %v1024_v57 = vld.sshfl [vmem:[#allocation1 + $0x18] sm:$0xff pattern:$0x75316420]  ;;  %v1023_v54 = vld.sshfl [vmem:[#allocation1 + $0x10] sm:$0xff pattern:$0x75316420] }
 0x34e   :  { %976 = vrot.lane.b32.xlu1 %v969_v43, %s1811_s17  ;;  %972 = vrot.lane.b32.xlu0 %v967_v45, %s1811_s17  ;;  %1060 = vst [vmem:[#allocation1 + $0x10] ss:$2 sm:$0xff] %v915_v26  ;;  %v1223_v26 = vld [vmem:[#allocation2 + $0x14] sm:$0xf] }
 0x34f   :  { %974 = vrot.lane.b32.xlu2 %v968_v59, %s1811_s17  ;;  %v1021_v24 = vld.sshfl [vmem:[#allocation1] sm:$0xff pattern:$0x75316420]  ;;  %v2389_v58 = vld.sshfl [vmem:[#allocation1 + $0x8] sm:$0xff pattern:$0x75316420] }
 0x350   :  { %v1025_v12 = vld.sshfl [vmem:[#allocation1 + $0x20] sm:$0xff pattern:$0x75316420]  ;;  %1058 = vst [vmem:[#allocation1] ss:$2 sm:$0xff] %v914_v29 }
 0x351   :  { %1062 = vst [vmem:[#allocation1 + $0x20] ss:$2 sm:$0xff] %v1054_v52 }
 0x355   :  { %v1065_v41 = vld.sshfl [vmem:[#allocation1 + $0x10] sm:$0xff pattern:$0x75316420]  ;;  %v1066_v21 = vld.sshfl [vmem:[#allocation1 + $0x18] sm:$0xff pattern:$0x75316420] }
 0x356   :  { %1032 = vrot.lane.b32.xlu1 %v1024_v57, %s1812_s18  ;;  %1072 = vrot.lane.b32.xlu0 %v1065_v41, %s1813_s19  ;;  %1112 = vst [vmem:[#allocation1 + $0x10] ss:$2 sm:$0xff] %v2373_v15 }
 0x357   :  { %1030 = vrot.lane.b32.xlu2 %v1023_v54, %s1812_s18  ;;  %v1064_v36 = vld.sshfl [vmem:[#allocation1 + $0x8] sm:$0xff pattern:$0x75316420]  ;;  %v1063_v22 = vld.sshfl [vmem:[#allocation1] sm:$0xff pattern:$0x75316420] }
 0x358   :  { %v1067_v38 = vld.sshfl [vmem:[#allocation1 + $0x20] sm:$0xff pattern:$0x75316420]  ;;  %1110 = vst [vmem:[#allocation1] ss:$2 sm:$0xff] %v2370_v30 }
 0x359   :  { %1135 = vst [vmem:[#allocation1 + $0x20] ss:$2 sm:$0xff] %v1127_v60  ;;  %v1759_v60 = vld [vmem:[%s2694_s2 + $0x70] sm:$0xff] }
 0x35a   :  { %vm1484_vm10 = vcmp.gt.f32.partialorder %v1759_v60, 0.5 }
 0x35d   :  { %v1115_v25 = vld.sshfl [vmem:[#allocation1 + $0x10] sm:$0xff pattern:$0x75316420]  ;;  %v1116_v39 = vld.sshfl [vmem:[#allocation1 + $0x18] sm:$0xff pattern:$0x75316420] }
 0x35e   :  { %1034 = vrot.lane.b32.xlu1 %v1025_v12, %s1812_s18  ;;  %1123 = vst [vmem:[#allocation3 + $0x28] sm:$0xf] %v1115_v25  ;;  %1076 = vrot.lane.b32.xlu0 %v1067_v38, %s1813_s19  ;;  %v2845_v12 = vmov 0   ;;  %v1760_v25 = vld [vmem:[%s2694_s2 + $0x78] sm:$0xf] }
 0x35f   :  { %1074 = vrot.lane.b32.xlu2 %v1066_v21, %s1813_s19  ;;  %1124 = vst [vmem:[#allocation3 + $0x40] sm:$0xf] %v1116_v39  ;;  %v1113_v61 = vld.sshfl [vmem:[#allocation1] sm:$0xff pattern:$0x75316420]  ;;  %v1763_v21 = vld [vmem:[%s2694_s2 + $0x90] sm:$0xff] }
 0x360   :  { %1133 = vst [vmem:[#allocation1 + $0x10] ss:$2 sm:$0xff] %v2373_v15  ;;  %v1114_v13 = vld.sshfl [vmem:[#allocation1 + $0x8] sm:$0xff pattern:$0x75316420]  ;;  %vm1562_vm2 = vcmp.gt.f32.partialorder %v1763_v21, 0.5 }
 0x361   :  { %1121 = vst [vmem:[#allocation3 + $0x8] sm:$0xf] %v1113_v61  ;;  %v1140_v5 = vld.sshfl [vmem:[#allocation1 + $0x20] sm:$0xff pattern:$0x75316420]  ;;  %vm1485_vm6 = vcmp.gt.f32.partialorder %v1760_v25, 0.5 }
 0x362   :  { %1122 = vst [vmem:[#allocation3 + $0x88] sm:$0xf] %v1114_v13 }
 0x363   :  { %1131 = vst [vmem:[#allocation1] ss:$2 sm:$0xff] %v2370_v30 }
 0x364   :  { %1189 = vst [vmem:[#allocation1 + $0x20] ss:$2 sm:$0xff] %v1181_v9  ;;  %v1764_v9 = vld [vmem:[%s2694_s2 + $0x98] sm:$0xf] }
 0x365   :  { %vm1563_vm0 = vcmp.gt.f32.partialorder %v1764_v9, 0.5 }
 0x366   :  { %1026 = vrot.lane.b32.xlu1 %v1021_v24, %s1812_s18  ;;  %1068 = vrot.lane.b32.xlu0 %v1063_v22, %s1813_s19  ;;  %v1486_v22 = vsel %vm1484_vm10, 1, %v2845_v12 }
 0x367   :  { %1070 = vrot.lane.b32.xlu2 %v1064_v36, %s1813_s19  ;;  %v1139_v20 = vld.sshfl [vmem:[#allocation1 + $0x18] sm:$0xff pattern:$0x75316420]  ;;  %v1138_v29 = vld.sshfl [vmem:[#allocation1 + $0x10] sm:$0xff pattern:$0x75316420] }
 0x368   :  { %1187 = vst [vmem:[#allocation1 + $0x10] ss:$2 sm:$0xff] %v2373_v15  ;;  %v1564_v36 = vsel %vm1562_vm2, 1, %v2845_v12  ;;  %vm2848_vm2 = vcmask 130048  }
 0x36a   :  { %v1136_v44 = vld.sshfl [vmem:[#allocation1] sm:$0xff pattern:$0x75316420]  ;;  %v1137_v27 = vld.sshfl [vmem:[#allocation1 + $0x8] sm:$0xff pattern:$0x75316420] }
 0x36b   :  { %v1194_v28 = vld.sshfl [vmem:[#allocation1 + $0x20] sm:$0xff pattern:$0x75316420]  ;;  %1185 = vst [vmem:[#allocation1] ss:$2 sm:$0xff] %v2370_v30 }
 0x36c   :  { %1231 = vst [vmem:[#allocation1 + $0x20] ss:$2 sm:$0xff] %v1223_v26 }
 0x36e   :  { %1149 = vrot.lane.b32.xlu1 %v1140_v5, %s1814_s20  ;;  %1147 = vrot.lane.b32.xlu0 %v1139_v20, %s1814_s20 }
 0x36f   :  { %1141 = vrot.lane.b32.xlu2 %v1136_v44, %s1814_s20  ;;  %v1192_v6 = vld.sshfl [vmem:[#allocation1 + $0x10] sm:$0xff pattern:$0x75316420]  ;;  %v1193_v1 = vld.sshfl [vmem:[#allocation1 + $0x18] sm:$0xff pattern:$0x75316420] }
 0x370   :  { %1229 = vst [vmem:[#allocation1 + $0x10] ss:$2 sm:$0xff] %v2373_v15  ;;  %v1565_v44 = vsel %vm1563_vm0, 1, %v2845_v12  ;;  %vm2853_vm0 = vcmp.ge.s32.totalorder %v2023_v53, 1 }
 0x372   :  { %v1190_v43 = vld.sshfl [vmem:[#allocation1] sm:$0xff pattern:$0x75316420]  ;;  %v1191_v47 = vld.sshfl [vmem:[#allocation1 + $0x8] sm:$0xff pattern:$0x75316420] }
 0x373   :  { %v1236_v59 = vld.sshfl [vmem:[#allocation1 + $0x20] sm:$0xff pattern:$0x75316420]  ;;  %1227 = vst [vmem:[#allocation1] ss:$2 sm:$0xff] %v2370_v30 }
 0x374   :  { %1285 = vst [vmem:[#allocation1 + $0x20] ss:$2 sm:$0xff] %v1277_v42 }
 0x376   :  { %1145 = vrot.lane.b32.xlu1 %v1138_v29, %s1814_s20  ;;  %1203 = vrot.lane.b32.xlu0 %v1194_v28, %s1815_s21 }
 0x377   :  { %1245 = vrot.lane.b32.xlu2 %v1236_v59, %s1816_s22  ;;  %v1234_v45 = vld.sshfl [vmem:[#allocation1 + $0x10] sm:$0xff pattern:$0x75316420]  ;;  %v1235_v32 = vld.sshfl [vmem:[#allocation1 + $0x18] sm:$0xff pattern:$0x75316420] }
 0x378   :  { %1283 = vst [vmem:[#allocation1 + $0x10] ss:$2 sm:$0xff] %v2373_v15 }
 0x37a   :  { %v1232_v57 = vld.sshfl [vmem:[#allocation1] sm:$0xff pattern:$0x75316420]  ;;  %v1233_v54 = vld.sshfl [vmem:[#allocation1 + $0x8] sm:$0xff pattern:$0x75316420] }
 0x37b   :  { %1281 = vst [vmem:[#allocation1] ss:$2 sm:$0xff] %v2370_v30  ;;  %v1290_v52 = vld.sshfl [vmem:[#allocation1 + $0x20] sm:$0xff pattern:$0x75316420] }
 0x37c   :  { %v1761_v30 = vld [vmem:[%s2694_s2 + $0x80] sm:$0xff] }
 0x37d   :  { %vm1523_vm14 = vcmp.gt.f32.partialorder %v1761_v30, 0.5 }
 0x37e   :  { %1199 = vrot.lane.b32.xlu0 %v1192_v6, %s1815_s21  ;;  %1143 = vrot.lane.b32.xlu1 %v1137_v27, %s1814_s20  ;;  %v1525_v41 = vsel %vm1523_vm14, 1, %v2845_v12  ;;  %v1757_v27 = vld [vmem:[%s2694_s2 + $0x60] sm:$0xff]  ;;  %vm2847_vm14 = vmmov %vm2846_vm7  ;;  %s1714_s20 = sshll.u32 %s2695_s3, 4  ;;  %s1715_s20 = int_to_ptr.hbm [resolvable:$true] %s1714_s20 }
 0x37f   :  { %1197 = vrot.lane.b32.xlu2 %v1191_v47, %s1815_s21  ;;  %v1289_v15 = vld.sshfl [vmem:[#allocation1 + $0x18] sm:$0xff pattern:$0x75316420]  ;;  %v1288_v38 = vld.sshfl [vmem:[#allocation1 + $0x10] sm:$0xff pattern:$0x75316420] }
 0x380   :  { %vm1453_vm15 = vcmp.gt.f32.partialorder %v1757_v27, 0.5 }
 0x382   :  { %v1287_v24 = vld.sshfl [vmem:[#allocation1 + $0x8] sm:$0xff pattern:$0x75316420]  ;;  %v1286_v61 = vld.sshfl [vmem:[#allocation1] sm:$0xff pattern:$0x75316420] }
 0x386   :  { %1201 = vrot.lane.b32.xlu0 %v1193_v1, %s1815_s21  ;;  %1299 = vrot.lane.b32.xlu1 %v1290_v52, %s1817_s23 }
 0x387   :  { %1237 = vrot.lane.b32.xlu2 %v1232_v57, %s1816_s22 }
 0x38e   :  { %1195 = vrot.lane.b32.xlu0 %v1190_v43, %s1815_s21  ;;  %1239 = vrot.lane.b32.xlu1 %v1233_v54, %s1816_s22 }
 0x38f   :  { %1297 = vrot.lane.b32.xlu2 %v1289_v15, %s1817_s23 }
 0x396   :  { %1241 = vrot.lane.b32.xlu0 %v1234_v45, %s1816_s22  ;;  %932 = vrot.lane.b32.xlu1 %v2379_v16, %s1810_s16  ;;  %v1455_v45 = vsel %vm1453_vm15, 1, %v2845_v12  ;;  %vm2854_vm15 = vcmp.ge.s32.totalorder %v1926_v62, 1 }
 0x397   :  { %1293 = vrot.lane.b32.xlu2 %v1287_v24, %s1817_s23 }
 0x39e   :  { %1243 = vrot.lane.b32.xlu0 %v1235_v32, %s1816_s22  ;;  %1528 = vperm.xlu1 %1777, %v1525_v41  }
 0x39f   :  { %930 = vrot.lane.b32.xlu2 %v2377_v31, %s1810_s16  ;;  %v1487_v31 = vsel %vm1485_vm6, 1, %v2845_v12  ;;  %vm2850_vm6 = vmmov %vm2848_vm2 }
 0x3a1   :  { %v981_v16 = vpop.permute.xlu2 %980 }
 0x3a6   :  { %1295 = vrot.lane.b32.xlu0 %v1288_v38, %s1817_s23  ;;  %1567 = vperm.xlu1 %1777, %v1564_v36  }
 0x3a7   :  { %1489 = vperm.xlu2 %1778, %v1486_v22   ;;  %v1762_v22 = vld [vmem:[%s2694_s2 + $0x88] sm:$0xf] }
 0x3a9   :  { %v975_v39 = vpop.permute.xlu2 %974 }
 0x3ae   :  { %1291 = vrot.lane.b32.xlu0 %v1286_v61, %s1817_s23 }
 0x3af   :  { %1492 = vperm.xlu2 %1778, %v1487_v31  }
 0x3b0   :  { %v937_v13 = vpop.permute.xlu0 %936  ;;  %v2453_v5 = vpop.permute.xlu1 %934 }
 0x3b1   :  { %v942_v20 = vsel %vm2846_vm7, %v2453_v5, %v937_v13  ;;  %v2457_v29 = vpop.permute.xlu2 %1030  ;;  %vm2851_vm7 = vmmov %vm2848_vm2 }
 0x3b2   :  { %v950_v26 = vsel %vm1944_vm3, %v942_v20, 0.0  ;;  %vm2849_vm3 = vcmp.ge.s32.totalorder %v1959_v8, 1 }
 0x3b3   :  { %954 = vst [vmem:[#allocation3 + $0x50] sm:$0xf] %v950_v26 }
 0x3b6   :  { %1028 = vrot.lane.b32.xlu0 %v2389_v58, %s1812_s18  ;;  %v1758_v58 = vld [vmem:[%s2694_s2 + $0x68] sm:$0xf] }
 0x3b7   :  { %1570 = vperm.xlu2 %1778, %v1565_v44   ;;  %vm1454_vm10 = vcmp.gt.f32.partialorder %v1758_v58, 0.5 }
 0x3b8   :  { %v939_v28 = vpop.permute.xlu1 %938  ;;  %v979_v6 = vpop.permute.xlu0 %978  ;;  %v1456_v36 = vsel %vm1454_vm10, 1, %v2845_v12  ;;  %vm2859_vm10 = vnez %v2735_v0 }
 0x3b9   :  { %v943_v1 = vsel %vm2847_vm14, %v937_v13, %v939_v28  ;;  %v985_v42 = vsel %vm2848_vm2, %v979_v6, %v981_v16  ;;  %v1075_v2 = vpop.permute.xlu2 %1074  ;;  %vm2855_vm14 = vcmp.ge.s32.totalorder %v2047_v7, 1 }
 0x3ba   :  { %v951_v43 = vsel %vm2205_vm1, %v943_v1, 0.0  ;;  %v993_v47 = vsel %vm2849_vm3, %v985_v42, 0.0  ;;  %vm2852_vm1 = vmmov %vm2848_vm2  ;;  %vm1524_vm2 = vcmp.gt.f32.partialorder %v1762_v22, 0.5  ;;  %vm2856_vm3 = vcmask 121856  }
 0x3bb   :  { %955 = vst [vmem:[#allocation3 + $0x18] sm:$0xf] %v951_v43  ;;  %v1001_v59 = vrot.slane %v993_v47, 4  ;;  %v1526_v28 = vsel %vm1524_vm2, 1, %v2845_v12  ;;  %vm2870_vm2 = vnez %v2749_v51 }
 0x3bd   :  { %1009 = vst [vmem:[#allocation3 + $0x18] sm:$0xf0] %v1001_v59 }
 0x3be   :  { %1458 = vperm.xlu0 %1779, %v1455_v45  }
 0x3c0   :  { %v977_v32 = vpop.permute.xlu1 %976  ;;  %v973_v57 = vpop.permute.xlu0 %972 }
 0x3c1   :  { %v983_v54 = vsel %vm2850_vm6, %v975_v39, %v977_v32  ;;  %v984_v10 = vsel %vm2851_vm7, %v977_v32, %v979_v6  ;;  %v982_v52 = vsel %vm2852_vm1, %v973_v57, %v975_v39  ;;  %v1071_v15 = vpop.permute.xlu2 %1070  ;;  %vm2857_vm6 = vcmask 7168   ;;  %vm2860_vm1 = vmmov %vm2856_vm3 }
 0x3c2   :  { %v991_v30 = vsel %vm2853_vm0, %v983_v54, 0.0  ;;  %v992_v24 = vsel %vm2854_vm15, %v984_v10, 0.0  ;;  %v990_v41 = vsel %vm2855_vm14, %v982_v52, 0.0  ;;  %vm2858_vm7 = vmmov %vm2857_vm6  ;;  %vm2865_vm0 = vnez %v2739_v18 }
 0x3c3   :  { %v999_v21 = vrot.slane %v991_v30, 4  ;;  %v1000_v60 = vrot.slane %v992_v24, 4  ;;  %v998_v16 = vrot.slane %v990_v41, 4 }
 0x3c5   :  { %1007 = vst [vmem:[#allocation3 + $0x38] sm:$0xf0] %v999_v21 }
 0x3c6   :  { %1008 = vst [vmem:[#allocation3 + $0x50] sm:$0xf0] %v1000_v60  ;;  %1461 = vperm.xlu0 %1779, %v1456_v36  }
 0x3c7   :  { %1006 = vst [vmem:[#allocation3] sm:$0xf0] %v998_v16 }
 0x3c8   :  { %v1033_v38 = vpop.permute.xlu1 %1032  ;;  %v1073_v25 = vpop.permute.xlu0 %1072 }
 0x3c9   :  { %v1038_v39 = vsel %vm2856_vm3, %v2457_v29, %v1033_v38  ;;  %v1079_v31 = vsel %vm2857_vm6, %v1071_v15, %v1073_v25  ;;  %v1080_v61 = vsel %vm2858_vm7, %v1073_v25, %v1075_v2  ;;  %v1142_v27 = vpop.permute.xlu2 %1141  ;;  %vm2873_vm7 = vcmask 908288  }
 0x3ca   :  { %v1046_v9 = vsel %vm1979_vm8, %v1038_v39, 0.0  ;;  %v1087_v13 = vsel %vm2043_vm5, %v1079_v31, 0.0  ;;  %v1088_v20 = vsel %vm2859_vm10, %v1080_v61, 0.0  ;;  %vm2861_vm8 = vmmov %vm2857_vm6  ;;  %vm2874_vm10 = vnez %v2755_v11 }
 0x3cb   :  { %1050 = vst [vmem:[#allocation3 + $0x78] sm:$0xf] %v1046_v9  ;;  %v1095_v26 = vrot.slane %v1087_v13, 4  ;;  %v1096_v44 = vrot.slane %v1088_v20, 4  ;;  %vm2862_vm5 = vmmov %vm2857_vm6 }
 0x3cd   :  { %1103 = vst [vmem:[#allocation3 + $0x68] sm:$0xf0] %v1095_v26 }
 0x3ce   :  { %1104 = vst [vmem:[#allocation3 + $0x78] sm:$0xf0] %v1096_v44  ;;  %1531 = vperm.xlu0 %1779, %v1526_v28  }
 0x3d0   :  { %v1035_v6 = vpop.permute.xlu1 %1034  ;;  %v1077_v1 = vpop.permute.xlu0 %1076 }
 0x3d1   :  { %v1039_v19 = vsel %vm2860_vm1, %v1033_v38, %v1035_v6  ;;  %v1081_v42 = vsel %vm2861_vm8, %v1075_v2, %v1077_v1  ;;  %v2507_v47 = vpop.permute.xlu2 %1245  ;;  %vm2876_vm1 = vnez %v2773_v56 }
 0x3d2   :  { %v1047_v3 = vsel %vm2179_vm4, %v1039_v19, 0.0  ;;  %v1089_v0 = vsel %vm1999_vm11, %v1081_v42, 0.0  ;;  %vm2863_vm4 = vcmask 1039360  }
 0x3d3   :  { %1051 = vst [vmem:[#allocation3 + $0x80] sm:$0xf] %v1047_v3  ;;  %v1097_v43 = vrot.slane %v1089_v0, 4  ;;  %vm2864_vm11 = vmmov %vm2863_vm4 }
 0x3d4   :  { %vm2867_vm15 = vmmov %vm2863_vm4 }
 0x3d5   :  { %1105 = vst [vmem:[#allocation3 + $0x80] sm:$0xf0] %v1097_v43  ;;  %vm2868_vm14 = vmmov %vm2863_vm4 }
 0x3d8   :  { %v2509_v12 = vpop.permute.xlu1 %1026  ;;  %v1069_v59 = vpop.permute.xlu0 %1068 }
 0x3d9   :  { %v1078_v45 = vsel %vm2862_vm5, %v1069_v59, %v1071_v15  ;;  %v1198_v40 = vpop.permute.xlu2 %1197  ;;  %vm2878_vm5 = vcmask 916480  }
 0x3da   :  { %v1086_v58 = vsel %vm2071_vm9, %v1078_v45, 0.0  ;;  %vm2866_vm9 = vcmask 924672  }
 0x3db   :  { %v1094_v2 = vrot.slane %v1086_v58, 4  ;;  %vm2871_vm3 = vmmov %vm2866_vm9 }
 0x3dc   :  { %vm2872_vm6 = vmmov %vm2871_vm3 }
 0x3dd   :  { %1102 = vst [vmem:[#allocation3 + $0x30] sm:$0xf0] %v1094_v2  ;;  %vm2877_vm8 = vmmov %vm2871_vm3 }
 0x3e0   :  { %v1150_v32 = vpop.permute.xlu1 %1149  ;;  %v1148_v57 = vpop.permute.xlu0 %1147 }
 0x3e1   :  { %v1154_v33 = vsel %vm2863_vm4, %v1148_v57, %v1150_v32  ;;  %v1238_v24 = vpop.permute.xlu2 %1237  ;;  %vm2879_vm4 = vnez %v2761_v23 }
 0x3e2   :  { %v1162_v54 = vsel %vm2003_vm12, %v1154_v33, 0.0  ;;  %vm2869_vm12 = vnez %v2757_v14 }
 0x3e3   :  { %v1170_v10 = vrot.slane %v1162_v54, 4 }
 0x3e5   :  { %1178 = vst [vmem:[#allocation3 + $0x40] sm:$0xf0] %v1170_v10 }
 0x3e8   :  { %v1146_v52 = vpop.permute.xlu1 %1145  ;;  %v1204_v30 = vpop.permute.xlu0 %1203 }
 0x3e9   :  { %v1153_v15 = vsel %vm2864_vm11, %v1146_v52, %v1148_v57  ;;  %v1298_v25 = vpop.permute.xlu2 %1297  ;;  %vm2880_vm11 = vcmp.le.s32.totalorder %v2047_v7, 14 }
 0x3ea   :  { %v1161_v17 = vsel %vm2865_vm0, %v1153_v15, 0.0  ;;  %vm2881_vm0 = vcmask 1043456   ;;  %v1327_v15 = vld [vmem:[#allocation3 + $0x80] sm:$0xff] }
 0x3eb   :  { %v1169_v41 = vrot.slane %v1161_v17, 4 }
 0x3ed   :  { %1177 = vst [vmem:[#allocation3 + $0x28] sm:$0xf0] %v1169_v41 }
 0x3f0   :  { %v1200_v21 = vpop.permute.xlu0 %1199  ;;  %v1144_v60 = vpop.permute.xlu1 %1143 }
 0x3f1   :  { %v1206_v16 = vsel %vm2866_vm9, %v1198_v40, %v1200_v21  ;;  %v1151_v36 = vsel %vm2867_vm15, %v1142_v27, %v1144_v60  ;;  %v1152_v34 = vsel %vm2868_vm14, %v1144_v60, %v1146_v52  ;;  %v1294_v44 = vpop.permute.xlu2 %1293  ;;  %vm2882_vm9 = vmmov %vm2878_vm5  ;;  %vm2883_vm15 = vcmask 138240  }
 0x3f2   :  { %v1214_v22 = vsel %vm2869_vm12, %v1206_v16, 0.0  ;;  %v1159_v38 = vsel %vm2015_vm13, %v1151_v36, 0.0  ;;  %v1160_v18 = vsel %vm2870_vm2, %v1152_v34, 0.0  ;;  %vm2875_vm13 = vnez %v2751_v63  ;;  %vm2884_vm14 = vmmov %vm2883_vm15 }
 0x3f3   :  { %1218 = vst [vmem:[#allocation3 + $0x10] sm:$0xf] %v1214_v22  ;;  %v1167_v39 = vrot.slane %v1159_v38, 4  ;;  %v1168_v31 = vrot.slane %v1160_v18, 4  ;;  %vm2885_vm12 = vcmp.le.s32.totalorder %v2023_v53, 14  ;;  %vm2886_vm2 = vnez %v2812_v49  ;;  %v1326_v18 = vld [vmem:[#allocation3 + $0x78] sm:$0xff] }
 0x3f4   :  { %v1330_v36 = vld [vmem:[#allocation3 + $0x28] sm:$0xff] }
 0x3f5   :  { %1175 = vst [vmem:[#allocation3 + $0x8] sm:$0xf0] %v1167_v39 }
 0x3f6   :  { %1176 = vst [vmem:[#allocation3 + $0x88] sm:$0xf0] %v1168_v31 }
 0x3f8   :  { %v1202_v61 = vpop.permute.xlu0 %1201  ;;  %v1300_v9 = vpop.permute.xlu1 %1299 }
 0x3f9   :  { %v1207_v13 = vsel %vm2871_vm3, %v1200_v21, %v1202_v61  ;;  %v1208_v20 = vsel %vm2872_vm6, %v1202_v61, %v1204_v30  ;;  %v1304_v14 = vsel %vm2873_vm7, %v1298_v25, %v1300_v9  ;;  %v931_v42 = vpop.permute.xlu2 %930  ;;  %vm2887_vm3 = vnez %v2809_v46  ;;  %vm2888_vm6 = vmmov %vm2878_vm5  ;;  %v1323_v21 = vld [vmem:[#allocation3 + $0x18] sm:$0xff] }
 0x3fa   :  { %v1215_v50 = vsel %vm2874_vm10, %v1207_v13, 0.0  ;;  %v1216_v51 = vsel %vm2875_vm13, %v1208_v20, 0.0  ;;  %v1312_v26 = vsel %vm2876_vm1, %v1304_v14, 0.0  ;;  %vm2889_vm7 = vmmov %vm2878_vm5  ;;  %vm2890_vm10 = vcmp.le.s32.totalorder %v1926_v62, 14  ;;  %v1744_v61 = vld [vmem:[%s2693_s1 + $0x18] sm:$0xf] }
 0x3fb   :  { %1219 = vst [vmem:[#allocation3 + $0x98] sm:$0xf] %v1215_v50  ;;  %vm2891_vm13 = vcmp.le.s32.totalorder %v1959_v8, 14  ;;  %vm2892_vm1 = vcmask 908288   ;;  %v1331_v8 = vld [vmem:[#allocation3 + $0x40] sm:$0xff] }
 0x3fc   :  { %1220 = vst [vmem:[#allocation3 + $0x60] sm:$0xf] %v1216_v51 }
 0x3fd   :  { %1316 = vst [vmem:[#allocation3 + $0x90] sm:$0xf] %v1312_v26  ;;  %v1329_v16 = vld [vmem:[#allocation3 + $0x88] sm:$0xff] }
 0x400   :  { %v1196_v27 = vpop.permute.xlu0 %1195  ;;  %v1240_v28 = vpop.permute.xlu1 %1239 }
 0x401   :  { %v1205_v6 = vsel %vm2877_vm8, %v1196_v27, %v1198_v40  ;;  %v1247_v1 = vsel %vm2878_vm5, %v1238_v24, %v1240_v28  ;;  %vm2893_vm8 = vmmov %vm2892_vm1  ;;  %vm2894_vm5 = vnez %v2768_v48  ;;  %v1743_v48 = vld [vmem:[%s2693_s1 + $0x10] sm:$0xff]  ;;  %v1490_v50 = vpop.permute.xlu2 %1489 }
 0x402   :  { %v1213_v11 = vsel %vm2879_vm4, %v1205_v6, 0.0  ;;  %v1255_v63 = vsel %vm2880_vm11, %v1247_v1, 0.0  ;;  %vm2895_vm4 = vnez %v2770_v55  ;;  %vm2896_vm11 = vmmov %vm2892_vm1 }
 0x403   :  { %1217 = vst [vmem:[#allocation3 + $0x58] sm:$0xf] %v1213_v11  ;;  %v1263_v19 = vrot.slane %v1255_v63, 4 }
 0x404   :  { %v1339_v56 = vld [vmem:[#allocation3 + $0x90] sm:$0xf] }
 0x405   :  { %1271 = vst [vmem:[#allocation3 + $0x58] sm:$0xf0] %v1263_v19  ;;  %1754 = vmatpush.msk.msrb.mxu3 %vm2881_vm0, %v1339_v56  ;;  %vm2897_vm0 = vnez %v2784_v35 }
 0x408   :  { %v1242_v3 = vpop.permute.xlu0 %1241  ;;  %v933_v0 = vpop.permute.xlu1 %932 }
 0x409   :  { %v1248_v43 = vsel %vm2882_vm9, %v1240_v28, %v1242_v3  ;;  %v940_v59 = vsel %vm2883_vm15, %v931_v42, %v933_v0  ;;  %v941_v23 = vsel %vm2884_vm14, %v933_v0, %v2453_v5  ;;  %vm2898_vm9 = vcmask 1043456   ;;  %v2600_v28 = vpop.permute.xlu2 %1492 }
 0x40a   :  { %v1256_v7 = vsel %vm2885_vm12, %v1248_v43, 0.0  ;;  %v948_v45 = vsel %vm2886_vm2, %v940_v59, 0.0  ;;  %v949_v58 = vsel %vm2887_vm3, %v941_v23, 0.0  ;;  %vm2899_vm15 = vmmov %vm2898_vm9  ;;  %vm2900_vm14 = vcmask 293888  }
 0x40b   :  { %v1264_v2 = vrot.slane %v1256_v7, 4  ;;  %952 = vst [vmem:[#allocation3] sm:$0xf] %v948_v45  ;;  %vm2901_vm12 = vcmask 121856   ;;  %vm2903_vm3 = vnez %v2803_v37 }
 0x40c   :  { %953 = vst [vmem:[#allocation3 + $0x38] sm:$0xf] %v949_v58  ;;  %vm2902_vm2 = vmmov %vm2901_vm12  ;;  %v1332_v37 = vld [vmem:[#allocation3 + $0x58] sm:$0xff] }
 0x40d   :  { %1272 = vst [vmem:[#allocation3 + $0x10] sm:$0xf0] %v1264_v2 }
 0x410   :  { %v1244_v40 = vpop.permute.xlu0 %1243  ;;  %v2596_v51 = vpop.permute.xlu1 %1528 }
 0x411   :  { %v1249_v32 = vsel %vm2888_vm6, %v1242_v3, %v1244_v40  ;;  %v1250_v57 = vsel %vm2889_vm7, %v1244_v40, %v2507_v47  ;;  %vm2904_vm6 = vnez %v2799_v4  ;;  %vm2905_vm7 = vmmov %vm2898_vm9  ;;  %v1328_v4 = vld [vmem:[#allocation3 + $0x8] sm:$0xff] }
 0x412   :  { %v1257_v53 = vsel %vm2890_vm10, %v1249_v32, 0.0  ;;  %v1258_v49 = vsel %vm2891_vm13, %v1250_v57, 0.0  ;;  %vm2906_vm10 = vmmov %vm2900_vm14  ;;  %v1320_v13 = vld [vmem:[#allocation3] sm:$0xff]  ;;  %v2611_v57 = vpop.permute.xlu2 %1570 }
 0x413   :  { %v1265_v5 = vrot.slane %v1257_v53, 4  ;;  %v1266_v33 = vrot.slane %v1258_v49, 4  ;;  %vm2907_vm13 = vmmov %vm2906_vm10  ;;  %v1321_v20 = vld [vmem:[#allocation3 + $0x38] sm:$0xff] }
 0x414   :  { %v1333_v60 = vld [vmem:[#allocation3 + $0x10] sm:$0xff] }
 0x415   :  { %1273 = vst [vmem:[#allocation3 + $0x98] sm:$0xf0] %v1265_v5 }
 0x416   :  { %1274 = vst [vmem:[#allocation3 + $0x60] sm:$0xf0] %v1266_v33 }
 0x418   :  { %v1296_v46 = vpop.permute.xlu0 %1295  ;;  %v1568_v42 = vpop.permute.xlu1 %1567 }
 0x419   :  { %v1302_v54 = vsel %vm2892_vm1, %v1294_v44, %v1296_v46  ;;  %v1303_v10 = vsel %vm2893_vm8, %v1296_v46, %v1298_v25  ;;  %vm2908_vm1 = vmmov %vm2906_vm10 }
 0x41a   :  { %v1310_v52 = vsel %vm2894_vm5, %v1302_v54, 0.0  ;;  %v1311_v47 = vsel %vm2895_vm4, %v1303_v10, 0.0  ;;  %vm2909_vm8 = vmmov %vm2908_vm1 }
 0x41b   :  { %1314 = vst [vmem:[#allocation3 + $0x48] sm:$0xf] %v1310_v52  ;;  %vm2910_vm5 = vmmov %vm2908_vm1 }
 0x41c   :  { %1315 = vst [vmem:[#allocation3 + $0x70] sm:$0xf] %v1311_v47  ;;  %v1334_v35 = vld [vmem:[#allocation3 + $0x98] sm:$0xff]  ;;  %vm2911_vm4 = vmmov %vm2908_vm1 }
 0x41d   :  { %v1335_v62 = vld [vmem:[#allocation3 + $0x60] sm:$0xff] }
 0x41e   :  { %1439 = vmatpush.msrb.mxu3 %v1335_v62 }
 0x420   :  { %1440 = vmatpush.msrb.mxu3 %v1331_v8  ;;  %v1292_v30 = vpop.permute.xlu0 %1291 }
 0x421   :  { %v1301_v24 = vsel %vm2896_vm11, %v1292_v30, %v1294_v44  ;;  %vm2912_vm11 = vmmov %vm2908_vm1 }
 0x422   :  { %v1309_v17 = vsel %vm2897_vm0, %v1301_v24, 0.0  ;;  %1441 = vmatpush.msrb.mxu3 %v1327_v15  ;;  %v1337_v41 = vld [vmem:[#allocation3 + $0x48] sm:$0xf]  ;;  %vm1494_vm0 = vcmp.eq.s32.totalorder %v1490_v50, 1 }
 0x423   :  { %1313 = vst [vmem:[#allocation3 + $0x20] sm:$0xf] %v1309_v17  ;;  %1748 = vmatpush.msk.msrb.mxu1 %vm2898_vm9, %v1337_v41  ;;  %v1338_v55 = vld [vmem:[#allocation3 + $0x70] sm:$0xf] }
 0x424   :  { %1751 = vmatpush.msk.msrb.mxu2 %vm2899_vm15, %v1338_v55  ;;  %1442 = vmatpush.msrb.mxu3 %v1323_v21  ;;  %vm1533_vm15 = vcmp.eq.s32.totalorder %v2596_v51, 1 }
 0x425   :  { %1755 = vmatmul.msk.f32.vlgmr.msrb.gmra.mxu3 %vm2900_vm14, %v1743_v48  ;;  %1393 = vmatpush.msrb.mxu1 %v1333_v60  ;;  %vm1495_vm14 = vcmp.eq.s32.totalorder %v2600_v28, 1 }
 0x426   :  { %1416 = vmatpush.msrb.mxu2 %v1334_v35 }
 0x427   :  { %1394 = vmatpush.msrb.mxu1 %v1329_v16 }
 0x428   :  { %1417 = vmatpush.msrb.mxu2 %v1330_v36  ;;  %v1029_v34 = vpop.permute.xlu0 %1028 }
 0x429   :  { %v1036_v22 = vsel %vm2901_vm12, %v2509_v12, %v1029_v34  ;;  %v1037_v38 = vsel %vm2902_vm2, %v1029_v34, %v2457_v29  ;;  %v1322_v12 = vld [vmem:[#allocation3 + $0x50] sm:$0xff]  ;;  %vm1572_vm12 = vcmp.eq.s32.totalorder %v1568_v42, 1 }
 0x42a   :  { %v1044_v25 = vsel %vm2903_vm3, %v1036_v22, 0.0  ;;  %v1045_v39 = vsel %vm2904_vm6, %v1037_v38, 0.0  ;;  %1418 = vmatpush.msrb.mxu2 %v1326_v18  ;;  %v1336_v31 = vld [vmem:[#allocation3 + $0x20] sm:$0xf]  ;;  %vm1573_vm6 = vcmp.eq.s32.totalorder %v2611_v57, 1 }
 0x42b   :  { %1048 = vst [vmem:[#allocation3 + $0x30] sm:$0xf] %v1044_v25  ;;  %1745 = vmatpush.msk.msrb.mxu0 %vm2905_vm7, %v1336_v31 }
 0x42c   :  { %1049 = vst [vmem:[#allocation3 + $0x68] sm:$0xf] %v1045_v39  ;;  %1419 = vmatpush.msrb.mxu2 %v1322_v12 }
 0x42d   :  { %1752 = vmatmul.msk.f32.vlgmr.msrb.gmra.mxu2 %vm2906_vm10, %v1743_v48  ;;  %1756 = vmatmul.msk.f32.gmra.mxu3 %vm2907_vm13, %v1744_v61  ;;  %vm2913_vm10 = vmmov %vm2905_vm7 }
 0x42e   :  { %1370 = vmatpush.msrb.mxu0 %v1332_v37  ;;  %vm2914_vm13 = vmmov %vm2905_vm7 }
 0x430   :  { %1371 = vmatpush.msrb.mxu0 %v1328_v4  ;;  %v1459_v14 = vpop.permute.xlu0 %1458 }
 0x431   :  { %vm1463_vm9 = vcmp.eq.s32.totalorder %v1459_v14, 1 }
 0x432   :  { %v1324_v29 = vld [vmem:[#allocation3 + $0x30] sm:$0xff] }
 0x433   :  { %1372 = vmatpush.msrb.mxu0 %v1324_v29  ;;  %v1325_v9 = vld [vmem:[#allocation3 + $0x68] sm:$0xff] }
 0x434   :  { %1395 = vmatpush.msrb.mxu1 %v1325_v9 }
 0x435   :  { %1753 = vmatmul.msk.f32.gmra.mxu2 %vm2908_vm1, %v1744_v61  ;;  %1373 = vmatpush.msrb.mxu0 %v1320_v13  ;;  %vm2915_vm1 = vmmov %vm2905_vm7 }
 0x436   :  { %1396 = vmatpush.msrb.mxu1 %v1321_v20  ;;  %1746 = vmatmul.msk.f32.vlgmr.msrb.gmra.mxu0 %vm2909_vm8, %v1743_v48  ;;  %vm2916_vm8 = vmmov %vm2915_vm1 }
 0x437   :  { %1749 = vmatmul.msk.f32.vlgmr.msrb.gmra.mxu1 %vm2910_vm5, %v1743_v48  ;;  %vm2917_vm5 = vmmov %vm2915_vm1 }
 0x438   :  { %v2598_v27 = vpop.permute.xlu0 %1461 }
 0x439   :  { %vm1464_vm2 = vcmp.eq.s32.totalorder %v2598_v27, 1 }
 0x43e   :  { %1747 = vmatmul.msk.f32.gmra.mxu0 %vm2911_vm4, %v1744_v61  ;;  %vm2918_vm4 = vmmov %vm2915_vm1 }
 0x43f   :  { %1750 = vmatmul.msk.f32.gmra.mxu1 %vm2912_vm11, %v1744_v61  ;;  %vm2919_vm11 = vmmov %vm2915_vm1 }
 0x440   :  { %v2609_v58 = vpop.permute.xlu0 %1531 }
 0x441   :  { %vm1534_vm3 = vcmp.eq.s32.totalorder %v2609_v58, 1 }
 0x4a8   :  { %v1444_v26 = vpop.f32.mrf.mxu3 }
 0x4a9   :  { %v1476_v44 = vmul.f32 %v1444_v26, %v1444_v26  ;;  %v1468_v11 = vsel %vm1463_vm9, %v1444_v26, 1.0 }
 0x4ab   :  { %v1499_v6 = vsel %vm1494_vm0, %v1476_v44, 1.0  ;;  %v1515_v1 = vmul.f32 %v1476_v44, %v1476_v44 }
 0x4ac   :  { %v1507_v63 = vmul.f32 %v1499_v6, %v1468_v11 }
 0x4ad   :  { %v1538_v3 = vsel %vm1533_vm15, %v1515_v1, 1.0  ;;  %v1554_v0 = vmul.f32 %v1515_v1, %v1515_v1 }
 0x4ae   :  { %v1546_v2 = vmul.f32 %v1538_v3, %v1507_v63 }
 0x4af   :  { %v1577_v53 = vsel %vm1572_vm12, %v1554_v0, 1.0 }
 0x4b0   :  { %v1421_v19 = vpop.f32.mrf.mxu2  ;;  %v1447_v56 = vpop.f32.mrf.mxu3  ;;  %v2624_v8 = vmul.f32 %v1577_v53, %v1546_v2 }
 0x4b1   :  { %v1475_v43 = vmul.f32 %v1421_v19, %v1421_v19  ;;  %v1480_v59 = vmul.f32 %v1447_v56, %v1447_v56  ;;  %v1467_v49 = vsel %vm1463_vm9, %v1421_v19, 1.0  ;;  %v1472_v41 = vsel %vm1464_vm2, %v1447_v56, 1.0 }
 0x4b3   :  { %v1498_v23 = vsel %vm1494_vm0, %v1475_v43, 1.0  ;;  %v1514_v7 = vmul.f32 %v1475_v43, %v1475_v43  ;;  %v1375_v45 = vpop.f32.mrf.mxu0  ;;  %v1519_v5 = vmul.f32 %v1480_v59, %v1480_v59  ;;  %v1503_v47 = vsel %vm1495_vm14, %v1480_v59, 1.0 }
 0x4b4   :  { %v1473_v40 = vmul.f32 %v1375_v45, %v1375_v45  ;;  %v1398_v32 = vpop.f32.mrf.mxu1  ;;  %v1506_v33 = vmul.f32 %v1498_v23, %v1467_v49  ;;  %v1465_v46 = vsel %vm1463_vm9, %v1375_v45, 1.0  ;;  %v1511_v35 = vmul.f32 %v1503_v47, %v1472_v41 }
 0x4b5   :  { %v1537_v52 = vsel %vm1533_vm15, %v1514_v7, 1.0  ;;  %v1553_v30 = vmul.f32 %v1514_v7, %v1514_v7  ;;  %v1474_v55 = vmul.f32 %v1398_v32, %v1398_v32  ;;  %v1558_v16 = vmul.f32 %v1519_v5, %v1519_v5 }
 0x4b6   :  { %v1496_v54 = vsel %vm1494_vm0, %v1473_v40, 1.0  ;;  %v1512_v10 = vmul.f32 %v1473_v40, %v1473_v40  ;;  %v1545_v60 = vmul.f32 %v1537_v52, %v1506_v33  ;;  %v1466_v34 = vsel %vm1463_vm9, %v1398_v32, 1.0 }
 0x4b7   :  { %v1504_v62 = vmul.f32 %v1496_v54, %v1465_v46  ;;  %v1497_v22 = vsel %vm1494_vm0, %v1474_v55, 1.0  ;;  %v1513_v38 = vmul.f32 %v1474_v55, %v1474_v55  ;;  %v1576_v39 = vsel %vm1572_vm12, %v1553_v30, 1.0 }
 0x4b8   :  { %v1535_v24 = vsel %vm1533_vm15, %v1512_v10, 1.0  ;;  %v1551_v15 = vmul.f32 %v1512_v10, %v1512_v10  ;;  %v1424_v17 = vpop.f32.mrf.mxu2  ;;  %v1505_v31 = vmul.f32 %v1497_v22, %v1466_v34  ;;  %v1542_v13 = vsel %vm1534_vm3, %v1519_v5, 1.0 }
 0x4b9   :  { %v1543_v48 = vmul.f32 %v1535_v24, %v1504_v62  ;;  %v1479_v21 = vmul.f32 %v1424_v17, %v1424_v17  ;;  %v1471_v61 = vsel %vm1464_vm2, %v1424_v17, 1.0  ;;  %v1536_v4 = vsel %vm1533_vm15, %v1513_v38, 1.0 }
 0x4ba   :  { %v1574_v36 = vsel %vm1572_vm12, %v1551_v15, 1.0  ;;  %v1552_v29 = vmul.f32 %v1513_v38, %v1513_v38  ;;  %v1544_v20 = vmul.f32 %v1536_v4, %v1505_v31  ;;  %v1584_v11 = vmul.f32 %v1576_v39, %v1545_v60 }
 0x4bb   :  { %v1502_v18 = vsel %vm1495_vm14, %v1479_v21, 1.0  ;;  %v1378_v25 = vpop.f32.mrf.mxu0  ;;  %v1518_v12 = vmul.f32 %v1479_v21, %v1479_v21  ;;  %v1582_v37 = vmul.f32 %v1574_v36, %v1543_v48  ;;  %v1550_v3 = vmul.f32 %v1542_v13, %v1511_v35 }
 0x4bc   :  { %v1477_v9 = vmul.f32 %v1378_v25, %v1378_v25  ;;  %v1510_v14 = vmul.f32 %v1502_v18, %v1471_v61  ;;  %v1469_v50 = vsel %vm1464_vm2, %v1378_v25, 1.0  ;;  %v1401_v26 = vpop.f32.mrf.mxu1  ;;  %v1575_v44 = vsel %vm1572_vm12, %v1552_v29, 1.0  ;;  %vm2921_vm12 = vmmov %vm2915_vm1 }
 0x4bd   :  { %v1541_v6 = vsel %vm1534_vm3, %v1518_v12, 1.0  ;;  %v1557_v1 = vmul.f32 %v1518_v12, %v1518_v12  ;;  %v1583_v63 = vmul.f32 %v1575_v44, %v1544_v20  ;;  %v1581_v0 = vsel %vm1573_vm6, %v1558_v16, 1.0 }
 0x4be   :  { %v1500_v51 = vsel %vm1495_vm14, %v1477_v9, 1.0  ;;  %v1516_v56 = vmul.f32 %v1477_v9, %v1477_v9  ;;  %v1594_v43 = vrot.slane %v1582_v37, 4  ;;  %v1478_v59 = vmul.f32 %v1401_v26, %v1401_v26 }
 0x4bf   :  { %v1508_v19 = vmul.f32 %v1500_v51, %v1469_v50  ;;  %v1549_v23 = vmul.f32 %v1541_v6, %v1510_v14  ;;  %v1470_v45 = vsel %vm1464_vm2, %v1401_v26, 1.0  ;;  %v1580_v2 = vsel %vm1573_vm6, %v1557_v1, 1.0 }
 0x4c0   :  { %v1539_v42 = vsel %vm1534_vm3, %v1516_v56, 1.0  ;;  %v1555_v7 = vmul.f32 %v1516_v56, %v1516_v56  ;;  %v1501_v32 = vsel %vm1495_vm14, %v1478_v59, 1.0  ;;  %v1517_v53 = vmul.f32 %v1478_v59, %v1478_v59  ;;  %vm2920_vm14 = vmmov %vm2915_vm1 }
 0x4c1   :  { %v1547_v40 = vmul.f32 %v1539_v42, %v1508_v19  ;;  %v1596_v49 = vrot.slane %v1584_v11, 4  ;;  %v1595_v5 = vrot.slane %v1583_v63, 4  ;;  %v1509_v46 = vmul.f32 %v1501_v32, %v1470_v45  ;;  %v1766_v42 = vld [vmem:[%s2694_s2 + $0xb0] sm:$0xff]  ;;  %v1673_v45 = vld [vmem:[%s2692_s0 + $0x8] sm:$0xff] }
 0x4c2   :  { %v1578_v33 = vsel %vm1573_vm6, %v1555_v7, 1.0  ;;  %v1602_v54 = vmul.f32 %v1594_v43, %v1582_v37  ;;  %v1540_v27 = vsel %vm1534_vm3, %v1517_v53, 1.0  ;;  %v1556_v52 = vmul.f32 %v1517_v53, %v1517_v53  ;;  %v1672_v7 = vld [vmem:[%s2692_s0] sm:$0xff]  ;;  %1678 = vst [vmem:[#allocation1 + $0x10] ss:$2 sm:$0xff] %v1673_v45  ;;  %s1819_s0 = smov [#allocation4]  }
 0x4c3   :  { %v1586_v10 = vmul.f32 %v1578_v33, %v1547_v40  ;;  %v1588_v47 = vmul.f32 %v1580_v2, %v1549_v23  ;;  %v1548_v62 = vmul.f32 %v1540_v27, %v1509_v46  ;;  %v1597_v30 = vrot.slane %v2624_v8, 4  ;;  %1676 = vst [vmem:[#allocation1] ss:$2 sm:$0xff] %v1672_v7 }
 0x4c4   :  { %v1579_v28 = vsel %vm1573_vm6, %v1556_v52, 1.0  ;;  %v1589_v15 = vmul.f32 %v1581_v0, %v1550_v3  ;;  %v1603_v17 = vmul.f32 %v1595_v5, %v1583_v63  ;;  %v1604_v48 = vmul.f32 %v1596_v49, %v1584_v11  ;;  %v1765_v0 = vld [vmem:[%s2694_s2 + $0xa0] sm:$0xff]  ;;  %s1712_s2 = sshll.u32 %s1819_s0, 4  ;;  %s1713_s2 = int_to_ptr.vmem [resolvable:$true] %s1712_s2 }
 0x4c5   :  { %v1606_v24 = vmul.f32 %v1602_v54, %v1586_v10  ;;  %v1587_v41 = vmul.f32 %v1579_v28, %v1548_v62  ;;  %v1605_v21 = vmul.f32 %v1597_v30, %v2624_v8 }
 0x4c6   :  { %v1608_v60 = vmul.f32 %v1604_v48, %v1588_v47 }
 0x4c7   :  { %v1607_v55 = vmul.f32 %v1603_v17, %v1587_v41  ;;  %v1614_v58 = vsel %vm2905_vm7, %v1606_v24, 0.0  ;;  %v1609_v35 = vmul.f32 %v1605_v21, %v1589_v15 }
 0x4c8   :  { %v1617_v34 = vsel %vm2914_vm13, %v1608_v60, 0.0 }
 0x4c9   :  { %v1615_v16 = vsel %vm2913_vm10, %v1607_v55, 0.0  ;;  %v1619_v57 = vsel %vm2915_vm1, %v1609_v35, 0.0  ;;  %v1681_v46 = vld.sshfl [vmem:[#allocation1 + $0x10] sm:$0xff pattern:$0x75316420] }
 0x4ca   :  { %v1616_v36 = vadd.f32 %v1615_v16, %v1614_v58  ;;  %v1679_v5 = vld.sshfl [vmem:[#allocation1] sm:$0xff pattern:$0x75316420]  ;;  %v1680_v33 = vld.sshfl [vmem:[#allocation1 + $0x8] sm:$0xff pattern:$0x75316420] }
 0x4cb   :  { %v1682_v54 = vld.sshfl [vmem:[#allocation1 + $0x18] sm:$0xff pattern:$0x75316420] }
 0x4cc   :  { %v1618_v22 = vadd.f32 %v1617_v34, %v1616_v36 }
 0x4ce   :  { %v1620_v38 = vadd.f32 %v1619_v57, %v1618_v22 }
 0x4d0   :  { %1621 = vadd.xlane.f32.xlu1 %v1620_v38 }
 0x543   :  { %v1622_v18 = vpop.xlane.xlu1 %1621 }
 0x544   :  { %v1623_v25 = vmul.f32 0.001953125, %v1622_v18 }
 0x546   :  { %v1624_v39 = vsub.f32 %v1606_v24, %v1623_v25  ;;  %v1625_v31 = vsub.f32 %v1607_v55, %v1623_v25  ;;  %v1626_v61 = vsub.f32 %v1608_v60, %v1623_v25  ;;  %v1627_v8 = vsub.f32 %v1609_v35, %v1623_v25 }
 0x548   :  { %v1628_v12 = vmul.f32 %v1624_v39, %v1624_v39  ;;  %v1629_v37 = vmul.f32 %v1625_v31, %v1625_v31  ;;  %v1630_v4 = vmul.f32 %v1626_v61, %v1626_v61  ;;  %v1631_v29 = vmul.f32 %v1627_v8, %v1627_v8 }
 0x54a   :  { %v1632_v9 = vsel %vm2916_vm8, %v1628_v12, 0.0  ;;  %v1633_v13 = vsel %vm2917_vm5, %v1629_v37, 0.0  ;;  %v1635_v14 = vsel %vm2918_vm4, %v1630_v4, 0.0  ;;  %v1637_v26 = vsel %vm2919_vm11, %v1631_v29, 0.0 }
 0x54b   :  { %v1634_v20 = vadd.f32 %v1633_v13, %v1632_v9 }
 0x54d   :  { %v1636_v50 = vadd.f32 %v1635_v14, %v1634_v20 }
 0x54f   :  { %v1638_v44 = vadd.f32 %v1637_v26, %v1636_v50 }
 0x551   :  { %1639 = vadd.xlane.f32.xlu0 %v1638_v44 }
 0x5c4   :  { %v1640_v6 = vpop.xlane.xlu0 %1639 }
 0x5c5   :  { %v1641_v1 = vmul.f32 0.001953125, %v1640_v6 }
 0x5c7   :  { %v1642_v51 = vadd.f32 1e-05, %v1641_v1 }
 0x5c9   :  { %1782 = vrsqrt.f32 %v1642_v51  ;;  %vm1649_vm9 = vweird.f32 %v1642_v51 }
 0x5cf   :  { %v1783_v11 = vpop.eup %1782 }
 0x5d0   :  { %v1644_v63 = vmul.f32 %v1783_v11, %v1642_v51  ;;  %vm1650_vm0 = vweird.f32 %v1783_v11 }
 0x5d1   :  { %vm1651_vm15 = vmor %vm1649_vm9, %vm1650_vm0 }
 0x5d2   :  { %v1645_v19 = vmul.f32 %v1783_v11, %v1644_v63 }
 0x5d4   :  { %v1646_v56 = vmul.f32 0.5, %v1645_v19 }
 0x5d6   :  { %v1647_v3 = vsub.f32 1.5, %v1646_v56 }
 0x5d8   :  { %v1648_v43 = vmul.f32 %v1783_v11, %v1647_v3 }
 0x5da   :  { %v1652_v59 = vsel %vm1651_vm15, %v1783_v11, %v1648_v43 }
 0x5db   :  { %v1653_v23 = vmul.f32 %v1765_v0, %v1652_v59 }
 0x5dd   :  { %1656 = vperm.xlu2 %1778, %v1653_v23  }
 0x5e5   :  { %1665 = vperm.xlu2 %1778, %v1766_v42  }
 0x637   :  { %v1657_v2 = vpop.permute.xlu2 %1656 }
 0x638   :  { %v1659_v40 = vmul.f32 %v1657_v2, %v1624_v39  ;;  %v1660_v32 = vmul.f32 %v1657_v2, %v1625_v31  ;;  %v1661_v53 = vmul.f32 %v1657_v2, %v1626_v61  ;;  %v1662_v49 = vmul.f32 %v1657_v2, %v1627_v8 }
 0x63f   :  { %v1666_v10 = vpop.permute.xlu2 %1665 }
 0x640   :  { %v1668_v27 = vadd.f32 %v1666_v10, %v1659_v40  ;;  %v1669_v52 = vadd.f32 %v1666_v10, %v1660_v32  ;;  %v1670_v47 = vadd.f32 %v1666_v10, %v1661_v53  ;;  %v1671_v62 = vadd.f32 %v1666_v10, %v1662_v49 }
 0x642   :  { %v1687_v30 = vadd.f32 %v1679_v5, %v1668_v27  ;;  %v1688_v24 = vadd.f32 %v1680_v33, %v1669_v52  ;;  %v1689_v28 = vadd.f32 %v1681_v46, %v1670_v47  ;;  %v1690_v15 = vadd.f32 %v1682_v54, %v1671_v62 }
 0x644   :  { %v1692_v17 = vmax.f32 %v1688_v24, 0.0  ;;  %v1694_v41 = vmax.f32 %v1690_v15, 0.0  ;;  %v1691_v48 = vmax.f32 %v1687_v30, 0.0  ;;  %v1693_v55 = vmax.f32 %v1689_v28, 0.0 }
 0x646   :  { %v1699_v21 = vrot.slane %v1692_v17, 4  ;;  %v1700_v60 = vrot.slane %v1694_v41, 4 }
 0x648   :  { %v1701_v58 = vsel %vm2920_vm14, %v1691_v48, %v1699_v21  ;;  %v1702_v35 = vsel %vm2921_vm12, %v1693_v55, %v1700_v60 }
 0x649   :  { %1705 = vst [vmem:[#allocation4] sm:$0xff] %v1701_v58 }
 0x64a   :  { %1706 = vst [vmem:[#allocation4 + $0x8] sm:$0xff] %v1702_v35 }
 0x64b   :  { %1717 = dma.vmem_to_hbm [thread:$0]  %s1713_s2, 256, %s1715_s20, [#allocation5]  }
 0x64c   :  { %1808 = dma.done.wait [#allocation5], 256  }
 0x64d   :  { %1809 = vsyncadd [#allocation5], 4294967040 }
 0x64e   :  { %1722 = vsyncpa [#allocation5], 1 }

</bundles_post_ra>
